<compile_context>
chip_gen: v7x
topology: tpu7x:2x2x1
jax: 0.10.0
libtpu: 0.0.40
codegen_flags: <defaults>
</compile_context>

<pallas_src>
import jax
import jax.numpy as jnp
from jax import lax
from jax.experimental import pallas as pl
from jax.experimental.pallas import tpu as pltpu

# ---- block configuration (small, deterministic) -----------------------------
N, H, W = 2, 16, 16            # batch, spatial
HW = H * W
CIN, CHID, COUT = 16, 32, 16   # inp, hidden_dim, oup
CRED = CHID // 4               # SE reduction channels
KS = 3                         # depthwise kernel size
EPS = 1e-5                     # BatchNorm eps (PyTorch default)

assert W & (W - 1) == 0, "W must be a power of two (in-kernel w = r mod W)"
assert CIN == COUT, "identity residual path requires inp == oup"

# packed parameter slab column layout (shape (CHID, NPC))
KK = KS * KS
SEW1_OFF = KK                   # se_w1^T  (CHID, CRED)
SEW2_OFF = SEW1_OFF + CRED      # se_w2^T  (CHID, CRED)
B1_COL = SEW2_OFF + CRED        # bn1 bias (CHID, 1)
B2_COL = B1_COL + 1             # bn2 bias (CHID, 1)
SEB2_COL = B2_COL + 1           # se fc2 bias (CHID, 1)
B3_COL = SEB2_COL + 1           # bn3 bias (COUT rows used)
NPC = B3_COL + 1

# TODO(synk): BatchNorm2d is implemented in eval mode (folded scale/bias from
# gamma/beta/running stats); training-mode batch statistics are not reproduced.
# Note: kernel matmuls use default MXU f32 precision; reference uses HIGHEST
# (validated to agree within 1e-4 at these shapes).


def _hardswish(x):
    return x * jnp.clip(x + 3.0, 0.0, 6.0) * (1.0 / 6.0)


# --------------------- fused per-sample kernel --------------------------------
def fused_block_kernel(x_ref, w1_ref, w3_ref, cmat_ref, seb1_ref, o_ref):
    x = x_ref[0]                                            # (CIN, HW)
    cmat = cmat_ref[...]                                    # (CHID, NPC)

    wdw = cmat[:, 0:KK]                                     # bn2-folded taps
    se_w1t = cmat[:, SEW1_OFF:SEW1_OFF + CRED]              # (CHID, CRED)
    se_w2t = cmat[:, SEW2_OFF:SEW2_OFF + CRED]              # (CHID, CRED)
    b1 = cmat[:, B1_COL:B1_COL + 1]                         # (CHID, 1)
    b2 = cmat[:, B2_COL:B2_COL + 1]
    se_b2 = cmat[:, SEB2_COL:SEB2_COL + 1]
    b3 = cmat[:COUT, B3_COL:B3_COL + 1]                     # (COUT, 1)

    # ---- 1x1 expand conv (BN1 scale folded) + bias + Hardswish ----
    h = jnp.dot(w1_ref[...], x, preferred_element_type=jnp.float32)  # (CHID, HW)
    h = _hardswish(h + b1)

    # ---- depthwise 3x3, SAME padding via lane rolls + hoisted boundary masks
    rr = lax.broadcasted_iota(jnp.int32, (1, HW), 1)        # linear pixel index
    wc = jnp.bitwise_and(rr, W - 1)                         # w = r mod W
    mh = {-1: rr >= W, 0: None, 1: rr < (H - 1) * W}
    mw = {-1: wc >= 1, 0: None, 1: wc <= W - 2}

    acc = jnp.zeros((CHID, HW), jnp.float32)
    for kh in range(KS):
        dh = kh - 1
        for kw in range(KS):
            dw = kw - 1
            k = kh * KS + kw
            shift = (-(dh * W + dw)) % HW                   # static shift
            shifted = h if shift == 0 else pltpu.roll(h, shift, 1)
            term = shifted * wdw[:, k:k + 1]                # (CHID, HW)
            if mh[dh] is not None and mw[dw] is not None:
                m = jnp.logical_and(mh[dh], mw[dw])
            elif mh[dh] is not None:
                m = mh[dh]
            else:
                m = mw[dw]
            if m is not None:
                term = jnp.where(m, term, 0.0)
            acc = acc + term
    y = acc + b2                                            # BN2 (scale folded)

    # ---- Squeeze-Excitation (tiny FCs on VPU/XLU; no 1-column MXU passes) ----
    pooled = jnp.mean(y, axis=1, keepdims=True)             # (CHID, 1)
    z = jnp.sum(se_w1t * pooled, axis=0, keepdims=True) + seb1_ref[...]  # (1, CRED)
    z = jnp.maximum(z, 0.0)
    g = jax.nn.sigmoid(jnp.sum(se_w2t * z, axis=1, keepdims=True) + se_b2)  # (CHID,1)
    y = _hardswish(y * g)

    # ---- 1x1 project conv (BN3 scale folded) + bias + identity residual ----
    out = jnp.dot(w3_ref[...], y, preferred_element_type=jnp.float32)  # (COUT, HW)
    o_ref[0] = x + out + b3


# ---------------------------- wrapper -----------------------------------------
@jax.jit
def mobilenetv3_block(x_nchw, p):
    x3d = x_nchw.astype(jnp.float32).reshape(N, CIN, HW)    # NCHW passthrough

    # fold BN scales into conv weights (tiny, trace-time work)
    w1f = (p['w1'] * p['bn1_s'].reshape(CHID, 1)).astype(jnp.float32)   # (CHID, CIN)
    w3f = (p['w3'] * p['bn3_s'].reshape(COUT, 1)).astype(jnp.float32)   # (COUT, CHID)
    wdwf = (p['wdw'].reshape(KK, CHID).T
            * p['bn2_s'].reshape(CHID, 1)).astype(jnp.float32)          # (CHID, KK)

    b3pad = jnp.concatenate(
        [p['bn3_b'].reshape(COUT, 1),
         jnp.zeros((CHID - COUT, 1), jnp.float32)], axis=0)
    cmat = jnp.concatenate(
        [wdwf,
         p['se_w1'],                               # (CHID, CRED) == FC1 W^T
         jnp.transpose(p['se_w2']),                # (CHID, CRED) == FC2 W^T
         p['bn1_b'].reshape(CHID, 1),
         p['bn2_b'].reshape(CHID, 1),
         p['se_b2'].reshape(CHID, 1),
         b3pad], axis=1).astype(jnp.float32)       # (CHID, NPC)
    seb1 = p['se_b1'].reshape(1, CRED).astype(jnp.float32)

    zero2 = lambda n: (0, 0)
    out3d = pl.pallas_call(
        fused_block_kernel,
        out_shape=jax.ShapeDtypeStruct((N, COUT, HW), jnp.float32),
        grid=(N,),
        in_specs=[
            pl.BlockSpec((1, CIN, HW), lambda n: (n, 0, 0)),   # x (per sample)
            pl.BlockSpec((CHID, CIN), zero2),                  # folded w1
            pl.BlockSpec((COUT, CHID), zero2),                 # folded w3
            pl.BlockSpec((CHID, NPC), zero2),                  # packed params
            pl.BlockSpec((1, CRED), zero2),                    # SE FC1 bias row
        ],
        out_specs=pl.BlockSpec((1, COUT, HW), lambda n: (n, 0, 0)),
        compiler_params=pltpu.CompilerParams(
            dimension_semantics=("parallel",),
            vmem_limit_bytes=8 * 1024 * 1024,
        ),
    )(x3d, w1f, w3f, cmat, seb1)

    return out3d.reshape(N, COUT, H, W)                      # already NCHW


# -------------------------- parameters ----------------------------------------
def _fold_bn(gamma, beta, mean, var):
    s = gamma / jnp.sqrt(var + EPS)
    b = beta - mean * s
    return s.reshape(1, -1).astype(jnp.float32), b.reshape(1, -1).astype(jnp.float32)


def init_params(key):
    ks = jax.random.split(key, 20)
    p = {}
    p['w1'] = 0.2 * jax.random.normal(ks[0], (CHID, CIN), jnp.float32)
    p['bn1_s'], p['bn1_b'] = _fold_bn(
        1.0 + 0.1 * jax.random.normal(ks[1], (CHID,)),
        0.05 * jax.random.normal(ks[2], (CHID,)),
        0.1 * jax.random.normal(ks[3], (CHID,)),
        0.8 + 0.2 * jax.random.uniform(ks[4], (CHID,)))
    p['wdw'] = 0.2 * jax.random.normal(ks[5], (KS, KS, CHID), jnp.float32)
    p['bn2_s'], p['bn2_b'] = _fold_bn(
        1.0 + 0.1 * jax.random.normal(ks[6], (CHID,)),
        0.05 * jax.random.normal(ks[7], (CHID,)),
        0.1 * jax.random.normal(ks[8], (CHID,)),
        0.8 + 0.2 * jax.random.uniform(ks[9], (CHID,)))
    p['se_w1'] = 0.2 * jax.random.normal(ks[10], (CHID, CRED), jnp.float32)
    p['se_b1'] = 0.05 * jax.random.normal(ks[11], (1, CRED), jnp.float32)
    p['se_w2'] = 0.2 * jax.random.normal(ks[12], (CRED, CHID), jnp.float32)
    p['se_b2'] = 0.05 * jax.random.normal(ks[13], (1, CHID), jnp.float32)
    p['w3'] = 0.2 * jax.random.normal(ks[14], (COUT, CHID), jnp.float32)
    p['bn3_s'], p['bn3_b'] = _fold_bn(
        1.0 + 0.1 * jax.random.normal(ks[15], (COUT,)),
        0.05 * jax.random.normal(ks[16], (COUT,)),
        0.1 * jax.random.normal(ks[17], (COUT,)),
        0.8 + 0.2 * jax.random.uniform(ks[18], (COUT,)))
    return p


# -------------------------- pure-JAX reference ---------------------------------
def reference(x_nchw, p):
    x = jnp.transpose(x_nchw, (0, 2, 3, 1)).astype(jnp.float32)   # NHWC
    hi = jax.lax.Precision.HIGHEST
    h = jnp.einsum('nhwc,dc->nhwd', x, p['w1'], precision=hi)
    h = _hardswish(h * p['bn1_s'].reshape(1, 1, 1, -1) + p['bn1_b'].reshape(1, 1, 1, -1))
    hp = jnp.pad(h, ((0, 0), (1, 1), (1, 1), (0, 0)))
    acc = jnp.zeros_like(h)
    for kh in range(KS):
        for kw in range(KS):
            acc = acc + hp[:, kh:kh + H, kw:kw + W, :] * p['wdw'][kh, kw, :]
    y = acc * p['bn2_s'].reshape(1, 1, 1, -1) + p['bn2_b'].reshape(1, 1, 1, -1)
    pooled = jnp.mean(y, axis=(1, 2))                      # (N, CHID)
    z = jnp.maximum(pooled @ p['se_w1'] + p['se_b1'], 0.0)
    g = jax.nn.sigmoid(z @ p['se_w2'] + p['se_b2'])
    y = _hardswish(y * g[:, None, None, :])
    out = jnp.einsum('nhwc,dc->nhwd', y, p['w3'], precision=hi)
    out = out * p['bn3_s'].reshape(1, 1, 1, -1) + p['bn3_b'].reshape(1, 1, 1, -1)
    out = x + out                                          # identity residual
    return jnp.transpose(out, (0, 3, 1, 2))


if __name__ == "__main__":
    key = jax.random.PRNGKey(0)
    kx, kp = jax.random.split(key)
    x_nchw = jax.random.normal(kx, (N, CIN, H, W), jnp.float32)
    params = init_params(kp)

    out = mobilenetv3_block(x_nchw, params)
    out = jax.block_until_ready(out)

    assert out.shape == (N, COUT, H, W), out.shape
    ref = reference(x_nchw, params)
    if not jnp.allclose(out, ref, atol=1e-4, rtol=1e-4):
        raise AssertionError("Pallas result does not match JAX reference")
    print("KERNEL_OK")
</pallas_src>

<mosaic_0001>
module attributes {stable_mosaic.version = 11 : i64} {
  func.func @fused_block_kernel(%arg0: i32, %arg1: memref<1x16x256xf32, #tpu.memory_space<vmem>>, %arg2: memref<32x16xf32, #tpu.memory_space<vmem>>, %arg3: memref<16x32xf32, #tpu.memory_space<vmem>>, %arg4: memref<32x29xf32, #tpu.memory_space<vmem>>, %arg5: memref<1x8xf32, #tpu.memory_space<vmem>>, %arg6: memref<1x16x256xf32, #tpu.memory_space<vmem>>) attributes {dimension_semantics = [#tpu.dimension_semantics<parallel>], iteration_bounds = array<i64: 2>, scalar_prefetch = 0 : i64, scratch_operands = 0 : i64, tpu.core_type = #tpu.core_type<tc>, window_params = [{transform_indices = @transform_0, window_bounds = array<i64: 1, 16, 256>}, {pipeline_mode = #tpu.pipeline_mode<synchronous>, transform_indices = @transform_1, window_bounds = array<i64: 32, 16>}, {pipeline_mode = #tpu.pipeline_mode<synchronous>, transform_indices = @transform_2, window_bounds = array<i64: 16, 32>}, {pipeline_mode = #tpu.pipeline_mode<synchronous>, transform_indices = @transform_3, window_bounds = array<i64: 32, 29>}, {pipeline_mode = #tpu.pipeline_mode<synchronous>, transform_indices = @transform_4, window_bounds = array<i64: 1, 8>}, {transform_indices = @transform_5, window_bounds = array<i64: 1, 16, 256>}]} {
    %c0 = arith.constant 0 : index
    %c0_0 = arith.constant 0 : index
    %c0_1 = arith.constant 0 : index
    %0 = vector.load %arg1[%c0, %c0_0, %c0_1] : memref<1x16x256xf32, #tpu.memory_space<vmem>>, vector<1x16x256xf32>
    %1 = vector.shape_cast %0 : vector<1x16x256xf32> to vector<16x256xf32>
    %c0_2 = arith.constant 0 : index
    %c0_3 = arith.constant 0 : index
    %2 = vector.load %arg4[%c0_2, %c0_3] : memref<32x29xf32, #tpu.memory_space<vmem>>, vector<32x29xf32>
    %3 = vector.extract_strided_slice %2 {offsets = [0, 0], sizes = [32, 9], strides = [1, 1]} : vector<32x29xf32> to vector<32x9xf32>
    %4 = vector.extract_strided_slice %2 {offsets = [0, 9], sizes = [32, 8], strides = [1, 1]} : vector<32x29xf32> to vector<32x8xf32>
    %5 = vector.extract_strided_slice %2 {offsets = [0, 17], sizes = [32, 8], strides = [1, 1]} : vector<32x29xf32> to vector<32x8xf32>
    %6 = vector.extract_strided_slice %2 {offsets = [0, 25], sizes = [32, 1], strides = [1, 1]} : vector<32x29xf32> to vector<32x1xf32>
    %7 = vector.extract_strided_slice %2 {offsets = [0, 26], sizes = [32, 1], strides = [1, 1]} : vector<32x29xf32> to vector<32x1xf32>
    %8 = vector.extract_strided_slice %2 {offsets = [0, 27], sizes = [32, 1], strides = [1, 1]} : vector<32x29xf32> to vector<32x1xf32>
    %9 = vector.extract_strided_slice %2 {offsets = [0, 28], sizes = [16, 1], strides = [1, 1]} : vector<32x29xf32> to vector<16x1xf32>
    %c0_4 = arith.constant 0 : index
    %c0_5 = arith.constant 0 : index
    %10 = vector.load %arg2[%c0_4, %c0_5] : memref<32x16xf32, #tpu.memory_space<vmem>>, vector<32x16xf32>
    %cst = arith.constant dense<0.000000e+00> : vector<32x256xf32>
    %11 = tpu.matmul %10, %1, %cst {dimension_numbers = #tpu.dot_dimension_numbers<[1], [0], [0], [1], [0, 0, 1, 1], [], []>} : vector<32x16xf32>, vector<16x256xf32>, vector<32x256xf32> -> vector<32x256xf32>
    %12 = vector.broadcast %6 : vector<32x1xf32> to vector<32x256xf32>
    %13 = arith.addf %11, %12 : vector<32x256xf32>
    %cst_6 = arith.constant 3.000000e+00 : f32
    %14 = vector.broadcast %cst_6 : f32 to vector<32x256xf32>
    %15 = arith.addf %13, %14 : vector<32x256xf32>
    %cst_7 = arith.constant 0.000000e+00 : f32
    %cst_8 = arith.constant 6.000000e+00 : f32
    %16 = vector.broadcast %cst_7 : f32 to vector<32x256xf32>
    %17 = arith.maximumf %16, %15 : vector<32x256xf32>
    %18 = vector.broadcast %cst_8 : f32 to vector<32x256xf32>
    %19 = arith.minimumf %18, %17 : vector<32x256xf32>
    %20 = arith.mulf %13, %19 : vector<32x256xf32>
    %cst_9 = arith.constant 0.166666672 : f32
    %21 = vector.broadcast %cst_9 : f32 to vector<32x256xf32>
    %22 = arith.mulf %20, %21 : vector<32x256xf32>
    %23 = tpu.iota {dimensions = array<i32: 1>} : vector<1x256xi32>
    %c15_i32 = arith.constant 15 : i32
    %24 = vector.broadcast %c15_i32 : i32 to vector<1x256xi32>
    %25 = arith.andi %23, %24 : vector<1x256xi32>
    %c16_i32 = arith.constant 16 : i32
    %26 = vector.broadcast %c16_i32 : i32 to vector<1x256xi32>
    %27 = arith.cmpi sge, %23, %26 : vector<1x256xi32>
    %c240_i32 = arith.constant 240 : i32
    %28 = vector.broadcast %c240_i32 : i32 to vector<1x256xi32>
    %29 = arith.cmpi slt, %23, %28 : vector<1x256xi32>
    %c1_i32 = arith.constant 1 : i32
    %30 = vector.broadcast %c1_i32 : i32 to vector<1x256xi32>
    %31 = arith.cmpi sge, %25, %30 : vector<1x256xi32>
    %c14_i32 = arith.constant 14 : i32
    %32 = vector.broadcast %c14_i32 : i32 to vector<1x256xi32>
    %33 = arith.cmpi sle, %25, %32 : vector<1x256xi32>
    %cst_10 = arith.constant 0.000000e+00 : f32
    %34 = vector.broadcast %cst_10 : f32 to vector<32x256xf32>
    %c17_i32 = arith.constant 17 : i32
    %35 = tpu.dynamic_rotate %22 by %c17_i32 dim 1 : vector<32x256xf32>, i32 -> vector<32x256xf32>
    %36 = vector.extract_strided_slice %3 {offsets = [0, 0], sizes = [32, 1], strides = [1, 1]} : vector<32x9xf32> to vector<32x1xf32>
    %37 = vector.broadcast %36 : vector<32x1xf32> to vector<32x256xf32>
    %38 = arith.mulf %35, %37 : vector<32x256xf32>
    %39 = arith.andi %27, %31 : vector<1x256xi1>
    %cst_11 = arith.constant 0.000000e+00 : f32
    %40 = vector.shape_cast %39 : vector<1x256xi1> to vector<1x256xi1>
    %41 = vector.broadcast %40 : vector<1x256xi1> to vector<32x256xi1>
    %42 = vector.broadcast %cst_11 : f32 to vector<32x256xf32>
    %43 = arith.select %41, %38, %42 : vector<32x256xi1>, vector<32x256xf32>
    %44 = arith.addf %34, %43 : vector<32x256xf32>
    %c16_i32_12 = arith.constant 16 : i32
    %45 = tpu.dynamic_rotate %22 by %c16_i32_12 dim 1 : vector<32x256xf32>, i32 -> vector<32x256xf32>
    %46 = vector.extract_strided_slice %3 {offsets = [0, 1], sizes = [32, 1], strides = [1, 1]} : vector<32x9xf32> to vector<32x1xf32>
    %47 = vector.broadcast %46 : vector<32x1xf32> to vector<32x256xf32>
    %48 = arith.mulf %45, %47 : vector<32x256xf32>
    %cst_13 = arith.constant 0.000000e+00 : f32
    %49 = vector.shape_cast %27 : vector<1x256xi1> to vector<1x256xi1>
    %50 = vector.broadcast %49 : vector<1x256xi1> to vector<32x256xi1>
    %51 = vector.broadcast %cst_13 : f32 to vector<32x256xf32>
    %52 = arith.select %50, %48, %51 : vector<32x256xi1>, vector<32x256xf32>
    %53 = arith.addf %44, %52 : vector<32x256xf32>
    %c15_i32_14 = arith.constant 15 : i32
    %54 = tpu.dynamic_rotate %22 by %c15_i32_14 dim 1 : vector<32x256xf32>, i32 -> vector<32x256xf32>
    %55 = vector.extract_strided_slice %3 {offsets = [0, 2], sizes = [32, 1], strides = [1, 1]} : vector<32x9xf32> to vector<32x1xf32>
    %56 = vector.broadcast %55 : vector<32x1xf32> to vector<32x256xf32>
    %57 = arith.mulf %54, %56 : vector<32x256xf32>
    %58 = arith.andi %27, %33 : vector<1x256xi1>
    %cst_15 = arith.constant 0.000000e+00 : f32
    %59 = vector.shape_cast %58 : vector<1x256xi1> to vector<1x256xi1>
    %60 = vector.broadcast %59 : vector<1x256xi1> to vector<32x256xi1>
    %61 = vector.broadcast %cst_15 : f32 to vector<32x256xf32>
    %62 = arith.select %60, %57, %61 : vector<32x256xi1>, vector<32x256xf32>
    %63 = arith.addf %53, %62 : vector<32x256xf32>
    %c1_i32_16 = arith.constant 1 : i32
    %64 = tpu.dynamic_rotate %22 by %c1_i32_16 dim 1 : vector<32x256xf32>, i32 -> vector<32x256xf32>
    %65 = vector.extract_strided_slice %3 {offsets = [0, 3], sizes = [32, 1], strides = [1, 1]} : vector<32x9xf32> to vector<32x1xf32>
    %66 = vector.broadcast %65 : vector<32x1xf32> to vector<32x256xf32>
    %67 = arith.mulf %64, %66 : vector<32x256xf32>
    %cst_17 = arith.constant 0.000000e+00 : f32
    %68 = vector.shape_cast %31 : vector<1x256xi1> to vector<1x256xi1>
    %69 = vector.broadcast %68 : vector<1x256xi1> to vector<32x256xi1>
    %70 = vector.broadcast %cst_17 : f32 to vector<32x256xf32>
    %71 = arith.select %69, %67, %70 : vector<32x256xi1>, vector<32x256xf32>
    %72 = arith.addf %63, %71 : vector<32x256xf32>
    %73 = vector.extract_strided_slice %3 {offsets = [0, 4], sizes = [32, 1], strides = [1, 1]} : vector<32x9xf32> to vector<32x1xf32>
    %74 = vector.broadcast %73 : vector<32x1xf32> to vector<32x256xf32>
    %75 = arith.mulf %22, %74 : vector<32x256xf32>
    %76 = arith.addf %72, %75 : vector<32x256xf32>
    %c255_i32 = arith.constant 255 : i32
    %77 = tpu.dynamic_rotate %22 by %c255_i32 dim 1 : vector<32x256xf32>, i32 -> vector<32x256xf32>
    %78 = vector.extract_strided_slice %3 {offsets = [0, 5], sizes = [32, 1], strides = [1, 1]} : vector<32x9xf32> to vector<32x1xf32>
    %79 = vector.broadcast %78 : vector<32x1xf32> to vector<32x256xf32>
    %80 = arith.mulf %77, %79 : vector<32x256xf32>
    %cst_18 = arith.constant 0.000000e+00 : f32
    %81 = vector.shape_cast %33 : vector<1x256xi1> to vector<1x256xi1>
    %82 = vector.broadcast %81 : vector<1x256xi1> to vector<32x256xi1>
    %83 = vector.broadcast %cst_18 : f32 to vector<32x256xf32>
    %84 = arith.select %82, %80, %83 : vector<32x256xi1>, vector<32x256xf32>
    %85 = arith.addf %76, %84 : vector<32x256xf32>
    %c241_i32 = arith.constant 241 : i32
    %86 = tpu.dynamic_rotate %22 by %c241_i32 dim 1 : vector<32x256xf32>, i32 -> vector<32x256xf32>
    %87 = vector.extract_strided_slice %3 {offsets = [0, 6], sizes = [32, 1], strides = [1, 1]} : vector<32x9xf32> to vector<32x1xf32>
    %88 = vector.broadcast %87 : vector<32x1xf32> to vector<32x256xf32>
    %89 = arith.mulf %86, %88 : vector<32x256xf32>
    %90 = arith.andi %29, %31 : vector<1x256xi1>
    %cst_19 = arith.constant 0.000000e+00 : f32
    %91 = vector.shape_cast %90 : vector<1x256xi1> to vector<1x256xi1>
    %92 = vector.broadcast %91 : vector<1x256xi1> to vector<32x256xi1>
    %93 = vector.broadcast %cst_19 : f32 to vector<32x256xf32>
    %94 = arith.select %92, %89, %93 : vector<32x256xi1>, vector<32x256xf32>
    %95 = arith.addf %85, %94 : vector<32x256xf32>
    %c240_i32_20 = arith.constant 240 : i32
    %96 = tpu.dynamic_rotate %22 by %c240_i32_20 dim 1 : vector<32x256xf32>, i32 -> vector<32x256xf32>
    %97 = vector.extract_strided_slice %3 {offsets = [0, 7], sizes = [32, 1], strides = [1, 1]} : vector<32x9xf32> to vector<32x1xf32>
    %98 = vector.broadcast %97 : vector<32x1xf32> to vector<32x256xf32>
    %99 = arith.mulf %96, %98 : vector<32x256xf32>
    %cst_21 = arith.constant 0.000000e+00 : f32
    %100 = vector.shape_cast %29 : vector<1x256xi1> to vector<1x256xi1>
    %101 = vector.broadcast %100 : vector<1x256xi1> to vector<32x256xi1>
    %102 = vector.broadcast %cst_21 : f32 to vector<32x256xf32>
    %103 = arith.select %101, %99, %102 : vector<32x256xi1>, vector<32x256xf32>
    %104 = arith.addf %95, %103 : vector<32x256xf32>
    %c239_i32 = arith.constant 239 : i32
    %105 = tpu.dynamic_rotate %22 by %c239_i32 dim 1 : vector<32x256xf32>, i32 -> vector<32x256xf32>
    %106 = vector.extract_strided_slice %3 {offsets = [0, 8], sizes = [32, 1], strides = [1, 1]} : vector<32x9xf32> to vector<32x1xf32>
    %107 = vector.broadcast %106 : vector<32x1xf32> to vector<32x256xf32>
    %108 = arith.mulf %105, %107 : vector<32x256xf32>
    %109 = arith.andi %29, %33 : vector<1x256xi1>
    %cst_22 = arith.constant 0.000000e+00 : f32
    %110 = vector.shape_cast %109 : vector<1x256xi1> to vector<1x256xi1>
    %111 = vector.broadcast %110 : vector<1x256xi1> to vector<32x256xi1>
    %112 = vector.broadcast %cst_22 : f32 to vector<32x256xf32>
    %113 = arith.select %111, %108, %112 : vector<32x256xi1>, vector<32x256xf32>
    %114 = arith.addf %104, %113 : vector<32x256xf32>
    %115 = vector.broadcast %7 : vector<32x1xf32> to vector<32x256xf32>
    %116 = arith.addf %114, %115 : vector<32x256xf32>
    %cst_23 = arith.constant dense<0.000000e+00> : vector<32xf32>
    %117 = vector.multi_reduction <add>, %116, %cst_23 [1] : vector<32x256xf32> to vector<32xf32>
    %118 = vector.shape_cast %117 : vector<32xf32> to vector<32x1xf32>
    %cst_24 = arith.constant 2.560000e+02 : f32
    %119 = vector.broadcast %cst_24 : f32 to vector<32x1xf32>
    %120 = arith.divf %118, %119 : vector<32x1xf32>
    %121 = vector.broadcast %120 : vector<32x1xf32> to vector<32x8xf32>
    %122 = arith.mulf %4, %121 : vector<32x8xf32>
    %cst_25 = arith.constant dense<0.000000e+00> : vector<8xf32>
    %123 = vector.multi_reduction <add>, %122, %cst_25 [0] : vector<32x8xf32> to vector<8xf32>
    %124 = vector.shape_cast %123 : vector<8xf32> to vector<1x8xf32>
    %c0_26 = arith.constant 0 : index
    %c0_27 = arith.constant 0 : index
    %125 = vector.load %arg5[%c0_26, %c0_27] : memref<1x8xf32, #tpu.memory_space<vmem>>, vector<1x8xf32>
    %126 = arith.addf %124, %125 : vector<1x8xf32>
    %cst_28 = arith.constant 0.000000e+00 : f32
    %127 = vector.broadcast %cst_28 : f32 to vector<1x8xf32>
    %128 = arith.maximumf %126, %127 : vector<1x8xf32>
    %129 = vector.broadcast %128 : vector<1x8xf32> to vector<32x8xf32>
    %130 = arith.mulf %5, %129 : vector<32x8xf32>
    %cst_29 = arith.constant dense<0.000000e+00> : vector<32xf32>
    %131 = vector.multi_reduction <add>, %130, %cst_29 [1] : vector<32x8xf32> to vector<32xf32>
    %132 = vector.shape_cast %131 : vector<32xf32> to vector<32x1xf32>
    %133 = arith.addf %132, %8 : vector<32x1xf32>
    %134 = arith.negf %133 : vector<32x1xf32>
    %135 = math.exp %134 : vector<32x1xf32>
    %cst_30 = arith.constant 1.000000e+00 : f32
    %136 = vector.broadcast %cst_30 : f32 to vector<32x1xf32>
    %137 = arith.addf %136, %135 : vector<32x1xf32>
    %138 = arith.divf %136, %137 : vector<32x1xf32>
    %139 = vector.broadcast %138 : vector<32x1xf32> to vector<32x256xf32>
    %140 = arith.mulf %116, %139 : vector<32x256xf32>
    %cst_31 = arith.constant 3.000000e+00 : f32
    %141 = vector.broadcast %cst_31 : f32 to vector<32x256xf32>
    %142 = arith.addf %140, %141 : vector<32x256xf32>
    %cst_32 = arith.constant 0.000000e+00 : f32
    %cst_33 = arith.constant 6.000000e+00 : f32
    %143 = vector.broadcast %cst_32 : f32 to vector<32x256xf32>
    %144 = arith.maximumf %143, %142 : vector<32x256xf32>
    %145 = vector.broadcast %cst_33 : f32 to vector<32x256xf32>
    %146 = arith.minimumf %145, %144 : vector<32x256xf32>
    %147 = arith.mulf %140, %146 : vector<32x256xf32>
    %cst_34 = arith.constant 0.166666672 : f32
    %148 = vector.broadcast %cst_34 : f32 to vector<32x256xf32>
    %149 = arith.mulf %147, %148 : vector<32x256xf32>
    %c0_35 = arith.constant 0 : index
    %c0_36 = arith.constant 0 : index
    %150 = vector.load %arg3[%c0_35, %c0_36] : memref<16x32xf32, #tpu.memory_space<vmem>>, vector<16x32xf32>
    %cst_37 = arith.constant dense<0.000000e+00> : vector<16x256xf32>
    %151 = tpu.matmul %150, %149, %cst_37 {dimension_numbers = #tpu.dot_dimension_numbers<[1], [0], [0], [1], [0, 0, 1, 1], [], []>} : vector<16x32xf32>, vector<32x256xf32>, vector<16x256xf32> -> vector<16x256xf32>
    %152 = arith.addf %1, %151 : vector<16x256xf32>
    %153 = vector.broadcast %9 : vector<16x1xf32> to vector<16x256xf32>
    %154 = arith.addf %152, %153 : vector<16x256xf32>
    %c0_38 = arith.constant 0 : index
    %c0_39 = arith.constant 0 : index
    %c0_40 = arith.constant 0 : index
    %155 = vector.load %arg6[%c0_38, %c0_39, %c0_40] : memref<1x16x256xf32, #tpu.memory_space<vmem>>, vector<1x16x256xf32>
    %156 = vector.shape_cast %155 : vector<1x16x256xf32> to vector<16x256xf32>
    %157 = vector.shape_cast %154 : vector<16x256xf32> to vector<1x16x256xf32>
    tpu.vector_store %arg6[%c0_38, %c0_39, %c0_40], %157 {strides = array<i32>} : memref<1x16x256xf32, #tpu.memory_space<vmem>>, vector<1x16x256xf32>,
    return
  }
  func.func @transform_0(%arg0: i32) -> (i32, i32, i32) {
    %c0_i32 = arith.constant 0 : i32
    %c0_i32_0 = arith.constant 0 : i32
    %c0_i32_1 = arith.constant 0 : i32
    return %arg0, %c0_i32, %c0_i32_0 : i32, i32, i32
  }
  func.func @transform_1(%arg0: i32) -> (i32, i32) {
    %c0_i32 = arith.constant 0 : i32
    %c0_i32_0 = arith.constant 0 : i32
    %c0_i32_1 = arith.constant 0 : i32
    return %c0_i32, %c0_i32_0 : i32, i32
  }
  func.func @transform_2(%arg0: i32) -> (i32, i32) {
    %c0_i32 = arith.constant 0 : i32
    %c0_i32_0 = arith.constant 0 : i32
    %c0_i32_1 = arith.constant 0 : i32
    return %c0_i32, %c0_i32_0 : i32, i32
  }
  func.func @transform_3(%arg0: i32) -> (i32, i32) {
    %c0_i32 = arith.constant 0 : i32
    %c0_i32_0 = arith.constant 0 : i32
    %c0_i32_1 = arith.constant 0 : i32
    return %c0_i32, %c0_i32_0 : i32, i32
  }
  func.func @transform_4(%arg0: i32) -> (i32, i32) {
    %c0_i32 = arith.constant 0 : i32
    %c0_i32_0 = arith.constant 0 : i32
    %c0_i32_1 = arith.constant 0 : i32
    return %c0_i32, %c0_i32_0 : i32, i32
  }
  func.func @transform_5(%arg0: i32) -> (i32, i32, i32) {
    %c0_i32 = arith.constant 0 : i32
    %c0_i32_0 = arith.constant 0 : i32
    %c0_i32_1 = arith.constant 0 : i32
    return %arg0, %c0_i32, %c0_i32_0 : i32, i32, i32
  }
}

</mosaic_0001>

<bundles_post_ra>
// kernel: mobilenetv3_block.1
= control target key start
LH: loop header
LB: loop body
LE: loop exit
PB: predicated region body
PF: predicated region fallthrough
CT: control target
= control target key end

     0   :  { %s1556_s18 = smov 0   ;;  %s2467_s0 = inlined_call_operand.vmem [shape: f32[2,16,256], index: 0, kind: input, shape index: {}]   ;;  %s2468_s1 = inlined_call_operand.vmem [shape: f32[32,16], index: 1, kind: input, shape index: {}]   ;;  %s2469_s2 = inlined_call_operand.vmem [shape: f32[16,32], index: 2, kind: input, shape index: {}]   ;;  %s2470_s3 = inlined_call_operand.vmem [shape: f32[32,29], index: 3, kind: input, shape index: {}]   ;;  %s2471_s4 = inlined_call_operand.vmem [shape: f32[1,8], index: 4, kind: input, shape index: {}]   ;;  %s2472_s5 = inlined_call_operand.vmem [shape: f32[2,16,256], index: 5, kind: output, shape index: {}]  }
   0x1 LB: > { %s1372_s19 = sadd.s32 4294967295, %s1500_s18   ;;  %p1376_p0 = scmp.ge.s32.totalorder %s1500_s18, 1  ;;  %s1500_s18 = sphi %s1556_s18, %s15_s18  }
   0x2   : > { %p187_p1 = scmp.lt.s32.totalorder %s1500_s18, 3 }
   0x4   : > { %p188_p2 = pnand %p1376_p0, %p187_p1 }
   0x6   : > { %191 = sbr.rel (%p188_p2) target bundleno = 1470 (0x5be), region = 40 }
   0xd   : > { %p215_p3 = scmp.lt.s32.totalorder %s1372_s19, 1  ;;  %v2473_v0 = vmov 0.0   ;;  %v1568_v1 = vld [vmem:[%s2470_s3 + $0x10] sm:$0xff]  ;;  %v1503_v2 = vmov 25   ;;  %v1576_v3 = vld [vmem:[%s2470_s3] sm:$0xff]  ;;  %v1584_v4 = vld [vmem:[%s2470_s3 + $0x18] sm:$0xff] }
   0xe   : > { %334 = vmatprep.mubr.f32.mxu0 %v2473_v0  ;;  %1284 = vmatprep.mubr.f32.mxu1 %v2473_v0  ;;  %v1596_v5 = vld [vmem:[%s2470_s3 + $0x8] sm:$0xff]  ;;  %v233_v12 = vld [vmem:[%s2468_s1] sm:$0xff]  ;;  %vm257_vm0 = vcmask 130048   ;;  %v1504_v13 = vmov 0   ;;  %v1505_v15 = vmov 1   ;;  %v235_v16 = vld [vmem:[%s2468_s1 + $0x10] sm:$0xff] }
   0xf   : > { %s2566_s19 = smov (!%p215_p3, %s1372_s19), 1  ;;  %1441 = vset.pattern.permute.xlu1 %v1503_v2  ;;  %1440 = vset.pattern.permute.xlu0 %v1503_v2  ;;  %v234_v14 = vld [vmem:[%s2468_s1 + $0x8] sm:$0xff]  ;;  %v236_v17 = vld [vmem:[%s2468_s1 + $0x18] sm:$0xff]  ;;  %v1506_v18 = vmov 2   ;;  %v1507_v19 = vmov 3   ;;  %v1508_v20 = vmov 4  }
  0x10   : > { %249 = vperm.xlu1 %1441, %v1568_v1   ;;  %239 = vperm.xlu0 %1440, %v1576_v3   ;;  %s1394_s24 = sshll.u32 %s2566_s19, 5  ;;  %v1509_v21 = vmov 5   ;;  %v1510_v22 = vmov 6   ;;  %v1511_v23 = vmov 8   ;;  %v1512_v24 = vmov 7   ;;  %s1514_s15 = smov 16  }
  0x11   : > { %s1591_s29 = scalar_lea.vmem %s2467_s0, %s1394_s24  ;;  %v1513_v25 = vmov 26   ;;  %s1515_s16 = smov 17  }
  0x12   : > { %v226_v6 = vld [vmem:[%s1591_s29 + $0x8] sm:$0xff]  ;;  %v228_v7 = vld [vmem:[%s1591_s29 + $0x18] sm:$0xff]  ;;  %v225_v8 = vld [vmem:[%s1591_s29] sm:$0xff]  ;;  %s1516_s17 = smov 15   ;;  %s1517_s20 = smov 112  }
  0x13   : > { %v1396_v9 = vpack.c.bf16 %v228_v7, %v226_v6  ;;  %v227_v10 = vld [vmem:[%s1591_s29 + $0x10] sm:$0xff]  ;;  %s1518_s21 = smov 1   ;;  %s1519_s22 = smov 111  }
  0x14   : > { %254 = vperm.xlu1 %1441, %v1584_v4   ;;  %244 = vperm.xlu0 %1440, %v1596_v5   ;;  %v1398_v11 = vpack.c.bf16 %v227_v10, %v225_v8  ;;  %s1520_s23 = smov 127   ;;  %s1521_s25 = smov 113  }
  0x15   : > { %1397 = vmatprep.subr.bf16.mxu0 %v1396_v9  ;;  %s1522_s28 = smov 9   ;;  %s1523_s13 = smov 8  }
  0x16   : > { %1399 = vmatpush1.bf16.msra.mxu0 %v1398_v11 }
  0x18   : > { %1443 = vset.pattern.permute.xlu1 %v1504_v13  ;;  %1442 = vset.pattern.permute.xlu0 %v1504_v13 }
  0x19   : > { %442 = vperm.xlu1 %1443, %v1596_v5   ;;  %438 = vperm.xlu0 %1442, %v1576_v3  }
  0x1a   : > { %1381 = vmatmul.mubr.msk.f32.vlgmr.msra.gmra.mrb[0].mxu0 %vm257_vm0, %v233_v12 }
  0x1b   : > { %340 = vmatprep.mubr.f32.mxu0 %v2473_v0 }
  0x1d   : > { %1444 = vset.pattern.permute.xlu1 %v1505_v15  ;;  %1445 = vset.pattern.permute.xlu0 %v1505_v15 }
  0x1e   : > { %1382 = vmatmul.mubr.msk.f32.gmra.mrb[2].mxu0 %vm257_vm0, %v234_v14  ;;  %509 = vperm.xlu1 %1444, %v1576_v3  }
  0x1f   : > { %346 = vmatprep.mubr.f32.mxu0 %v2473_v0  ;;  %513 = vperm.xlu0 %1445, %v1596_v5  }
  0x22   : > { %1383 = vmatmul.mubr.msk.f32.gmra.mrb[4].mxu0 %vm257_vm0, %v235_v16  ;;  %1446 = vset.pattern.permute.xlu1 %v1504_v13 }
  0x23   : > { %352 = vmatprep.mubr.f32.mxu0 %v2473_v0  ;;  %446 = vperm.xlu1 %1446, %v1568_v1  }
  0x24   : > { %521 = vperm.xlu0 %1445, %v1584_v4  }
  0x26   : > { %1384 = vmatmul.mubr.msk.f32.gmra.mrb[6].mxu0 %vm257_vm0, %v236_v17 }
  0x27   : > { %1447 = vset.pattern.permute.xlu1 %v1505_v15 }
  0x28   : > { %517 = vperm.xlu1 %1447, %v1568_v1   ;;  %1450 = vset.pattern.permute.xlu0 %v1506_v18 }
  0x29   : > { %578 = vperm.xlu0 %1450, %v1576_v3  }
  0x2c   : > { %1448 = vset.pattern.permute.xlu1 %v1506_v18 }
  0x2d   : > { %582 = vperm.xlu1 %1448, %v1596_v5   ;;  %590 = vperm.xlu0 %1450, %v1584_v4  }
  0x31   : > { %1449 = vset.pattern.permute.xlu1 %v1504_v13  ;;  %1453 = vset.pattern.permute.xlu0 %v1507_v19 }
  0x32   : > { %450 = vperm.xlu1 %1449, %v1584_v4   ;;  %653 = vperm.xlu0 %1453, %v1596_v5  }
  0x36   : > { %1451 = vset.pattern.permute.xlu1 %v1506_v18  ;;  %661 = vperm.xlu0 %1453, %v1584_v4  }
  0x37   : > { %586 = vperm.xlu1 %1451, %v1568_v1  }
  0x3a   : > { %1455 = vset.pattern.permute.xlu0 %v1508_v20 }
  0x3b   : > { %1452 = vset.pattern.permute.xlu1 %v1507_v19  ;;  %697 = vperm.xlu0 %1455, %v1596_v5  }
  0x3c   : > { %649 = vperm.xlu1 %1452, %v1576_v3  }
  0x3f   : > { %701 = vperm.xlu0 %1455, %v1568_v1  }
  0x40   : > { %657 = vperm.xlu1 %1452, %v1568_v1  }
  0x43   : > { %705 = vperm.xlu0 %1455, %v1584_v4  }
  0x44   : > { %1454 = vset.pattern.permute.xlu1 %v1508_v20 }
  0x45   : > { %693 = vperm.xlu1 %1454, %v1576_v3  }
  0x47   : > { %1458 = vset.pattern.permute.xlu0 %v1509_v21 }
  0x48   : > { %758 = vperm.xlu0 %1458, %v1568_v1  }
  0x49   : > { %1456 = vset.pattern.permute.xlu1 %v1509_v21 }
  0x4a   : > { %750 = vperm.xlu1 %1456, %v1576_v3  }
  0x4c   : > { %762 = vperm.xlu0 %1458, %v1584_v4  }
  0x4e   : > { %754 = vperm.xlu1 %1456, %v1596_v5  }
  0x50   : > { %1460 = vset.pattern.permute.xlu0 %v1510_v22 }
  0x51   : > { %831 = vperm.xlu0 %1460, %v1584_v4  }
  0x52   : > { %1457 = vset.pattern.permute.xlu1 %v1510_v22 }
  0x53   : > { %819 = vperm.xlu1 %1457, %v1576_v3  }
  0x55   : > { %1462 = vset.pattern.permute.xlu0 %v1511_v23 }
  0x56   : > { %963 = vperm.xlu0 %1462, %v1596_v5  }
  0x57   : > { %823 = vperm.xlu1 %1457, %v1596_v5  }
  0x5a   : > { %1463 = vset.pattern.permute.xlu0 %v1512_v24 }
  0x5b   : > { %827 = vperm.xlu1 %1457, %v1568_v1   ;;  %894 = vperm.xlu0 %1463, %v1596_v5  }
  0x5f   : > { %1459 = vset.pattern.permute.xlu1 %v1512_v24  ;;  %902 = vperm.xlu0 %1463, %v1584_v4  }
  0x60   : > { %890 = vperm.xlu1 %1459, %v1576_v3  }
  0x63   : > { %1464 = vset.pattern.permute.xlu0 %v1513_v25 }
  0x64   : > { %898 = vperm.xlu1 %1459, %v1568_v1   ;;  %1005 = vperm.xlu0 %1464, %v1576_v3  }
  0x68   : > { %1461 = vset.pattern.permute.xlu1 %v1511_v23 }
  0x69   : > { %959 = vperm.xlu1 %1461, %v1576_v3  }
  0x6d   : > { %967 = vperm.xlu1 %1461, %v1568_v1  }
  0x71   : > { %971 = vperm.xlu1 %1461, %v1584_v4  }
  0x75   : > { %1465 = vset.pattern.permute.xlu1 %v1513_v25 }
  0x76   : > { %1009 = vperm.xlu1 %1465, %v1596_v5  }
  0x7a   : > { %1013 = vperm.xlu1 %1465, %v1568_v1  }
  0x8f   : > { %v1662_v26 = vpop.permute.xlu1 %249  ;;  %v240_v28 = vpop.permute.xlu0 %239 }
  0x93   : > { %v1664_v27 = vpop.permute.xlu1 %254  ;;  %v245_v44 = vpop.permute.xlu0 %244 }
  0x98   : > { %v1666_v32 = vpop.permute.xlu1 %442  ;;  %v1702_v58 = vpop.permute.xlu0 %438 }
  0x9d   : > { %v1670_v41 = vpop.permute.xlu1 %509 }
  0x9e   : > { %v1712_v62 = vpop.permute.xlu0 %513 }
  0xa2   : > { %v1684_v50 = vpop.permute.xlu1 %446 }
  0xa3   : > { %v1724_v2 = vpop.permute.xlu0 %521 }
  0xa4   : > { %2497 = vst [vmem:[#allocation3_spill] sm:$0xff] %v1724_v2 }
  0xa7   : > { %v1690_v55 = vpop.permute.xlu1 %517 }
  0xa8   : > { %v1732_v7 = vpop.permute.xlu0 %578 }
  0xac   : > { %v1704_v59 = vpop.permute.xlu1 %582  ;;  %v1744_v10 = vpop.permute.xlu0 %590 }
  0xad   : > { %2498 = vst [vmem:[#allocation4_spill] sm:$0xff] %v1744_v10 }
  0xb1   : > { %v1714_v63 = vpop.permute.xlu1 %450  ;;  %v1756_v16 = vpop.permute.xlu0 %653 }
  0xb2   : > { %2496 = vst [vmem:[#allocation2_spill] sm:$0xff] %v1714_v63 }
  0xb5   : > { %v1770_v21 = vpop.permute.xlu0 %661 }
  0xb6   : > { %v1726_v3 = vpop.permute.xlu1 %586  ;;  %2499 = vst [vmem:[#allocation5_spill] sm:$0xff] %v1770_v21 }
  0xba   : > { %v1780_v25 = vpop.permute.xlu0 %697 }
  0xbb   : > { %v1734_v8 = vpop.permute.xlu1 %649 }
  0xbf   : > { %v1746_v12 = vpop.permute.xlu1 %657 }
  0xc4   : > { %v1758_v17 = vpop.permute.xlu1 %693 }
  0xc9   : > { %v1768_v19 = vpop.permute.xlu1 %750 }
  0xcd   : > { %v1778_v24 = vpop.permute.xlu1 %754 }
  0xed   : > { %v336_v29 = vpop.f32.mrb[0].mxu0 }
  0xee   : > { %v337_v30 = vadd.f32 %v336_v29, %v240_v28  ;;  %v338_v31 = vpop.f32.mrb[1].mxu0 }
  0xef   : > { %v339_v34 = vadd.f32 %v338_v31, %v240_v28 }
  0xf0   : > { %v359_v33 = vadd.f32 3.0, %v337_v30 }
  0xf1   : > { %v342_v35 = vpop.f32.mrb[2].mxu0  ;;  %v360_v39 = vadd.f32 3.0, %v339_v34 }
  0xf2   : > { %v367_v36 = vmax.f32 %v359_v33, 0.0  ;;  %v344_v37 = vpop.f32.mrb[3].mxu0  ;;  %v343_v47 = vadd.f32 %v342_v35, %v245_v44  ;;  %v1796_v33 = vpop.permute.xlu0 %701 }
  0xf3   : > { %v368_v46 = vmax.f32 %v360_v39, 0.0  ;;  %v345_v1 = vadd.f32 %v344_v37, %v245_v44 }
  0xf4   : > { %v375_v38 = vmin.f32 %v367_v36, 6.0  ;;  %v361_v52 = vadd.f32 3.0, %v343_v47 }
  0xf5   : > { %v1668_v40 = vpop.f32.mrb[4].mxu0  ;;  %v376_v51 = vmin.f32 %v368_v46, 6.0  ;;  %v362_v5 = vadd.f32 3.0, %v345_v1 }
  0xf6   : > { %v383_v42 = vmul.f32 %v375_v38, %v337_v30  ;;  %v1672_v43 = vpop.f32.mrb[5].mxu0  ;;  %v369_v54 = vmax.f32 %v361_v52, 0.0  ;;  %v349_v13 = vadd.f32 %v1668_v40, %v1662_v26  ;;  %v1804_v37 = vpop.permute.xlu0 %705 }
  0xf7   : > { %v384_v53 = vmul.f32 %v376_v51, %v339_v34  ;;  %v370_v6 = vmax.f32 %v362_v5, 0.0  ;;  %v351_v23 = vadd.f32 %v1672_v43, %v1662_v26  ;;  %v1792_v26 = vpop.permute.xlu1 %819  ;;  %2500 = vst [vmem:[#allocation6_spill] sm:$0xff] %v1804_v37 }
  0xf8   : > { %v1674_v45 = vmul.f32 0.16666667, %v383_v42  ;;  %v377_v57 = vmin.f32 %v369_v54, 6.0  ;;  %v363_v15 = vadd.f32 3.0, %v349_v13 }
  0xf9   : > { %v1676_v48 = vpop.f32.mrb[6].mxu0  ;;  %v1696_v56 = vmul.f32 0.16666667, %v384_v53  ;;  %v378_v9 = vmin.f32 %v370_v6, 6.0  ;;  %v364_v29 = vadd.f32 3.0, %v351_v23 }
  0xfa   : > { %v1678_v49 = vpop.f32.mrb[7].mxu0  ;;  %483 = vrot.lane.b32.xlu0 %v1674_v45, %s1514_s15  ;;  %412 = vrot.lane.b32.xlu1 %v1674_v45, %s1515_s16  ;;  %v385_v60 = vmul.f32 %v377_v57, %v343_v47  ;;  %v371_v18 = vmax.f32 %v363_v15, 0.0  ;;  %v355_v31 = vadd.f32 %v1676_v48, %v1664_v27  ;;  %v1816_v42 = vpop.permute.xlu0 %758 }
  0xfb   : > { %v386_v11 = vmul.f32 %v378_v9, %v345_v1  ;;  %v372_v30 = vmax.f32 %v364_v29, 0.0  ;;  %v1802_v36 = vpop.permute.xlu1 %823  ;;  %v357_v46 = vadd.f32 %v1678_v49, %v1664_v27 }
  0xfc   : > { %v1710_v61 = vmul.f32 0.16666667, %v385_v60  ;;  %v379_v20 = vmin.f32 %v371_v18, 6.0  ;;  %v365_v35 = vadd.f32 3.0, %v355_v31 }
  0xfd   : > { %v1754_v14 = vmul.f32 0.16666667, %v386_v11  ;;  %v380_v34 = vmin.f32 %v372_v30, 6.0  ;;  %v366_v51 = vadd.f32 3.0, %v357_v46 }
  0xfe   : > { %552 = vrot.lane.b32.xlu0 %v1674_v45, %s1516_s17  ;;  %864 = vrot.lane.b32.xlu1 %v1674_v45, %s1517_s20  ;;  %v387_v22 = vmul.f32 %v379_v20, %v349_v13  ;;  %v373_v39 = vmax.f32 %v365_v35, 0.0  ;;  %v1828_v52 = vpop.permute.xlu0 %762 }
  0xff   : > { %v388_v38 = vmul.f32 %v380_v34, %v351_v23  ;;  %v1810_v40 = vpop.permute.xlu1 %827  ;;  %2503 = vst [vmem:[#allocation9_spill] sm:$0xff] %v1828_v52  ;;  %v374_v27 = vmax.f32 %v366_v51, 0.0 }
 0x100   : > { %v1786_v28 = vmul.f32 0.16666667, %v387_v22  ;;  %2501 = vst [vmem:[#allocation7_spill] sm:$0xff] %v1810_v40  ;;  %v381_v44 = vmin.f32 %v373_v39, 6.0 }
 0x101   : > { %v1818_v43 = vmul.f32 0.16666667, %v388_v38  ;;  %v382_v57 = vmin.f32 %v374_v27, 6.0 }
 0x102   : > { %623 = vrot.lane.b32.xlu0 %v1674_v45, %s1518_s21  ;;  %933 = vrot.lane.b32.xlu1 %v1674_v45, %s1519_s22  ;;  %v389_v48 = vmul.f32 %v381_v44, %v355_v31  ;;  %v1842_v54 = vpop.permute.xlu0 %831 }
 0x103   : > { %2502 = vst [vmem:[#allocation8_spill] sm:$0xff] %v1818_v43  ;;  %v1826_v47 = vpop.permute.xlu1 %890  ;;  %2505 = vst [vmem:[#allocation11_spill] sm:$0xff] %v1842_v54  ;;  %v390_v1 = vmul.f32 %v382_v57, %v357_v46  ;;  %v2476_v46 = vlaneseq }
 0x104   : > { %v1834_v53 = vmul.f32 0.16666667, %v389_v48 }
 0x105   : > { %v1855_v6 = vmul.f32 0.16666667, %v390_v1  ;;  %v1912_v27 = vand.u32 127, %v2476_v46 }
 0x106   : > { %724 = vrot.lane.b32.xlu0 %v1674_v45, %s1520_s23  ;;  %872 = vrot.lane.b32.xlu1 %v1696_v56, %s1517_s20  ;;  %v1850_v5 = vpop.permute.xlu0 %963 }
 0x107   : > { %v1836_v49 = vpop.permute.xlu1 %898  ;;  %2506 = vst [vmem:[#allocation12_spill] sm:$0xff] %v1855_v6  ;;  %vm499_vm1 = vcmp.lt.s32.totalorder %v1912_v27, 16  ;;  %vm2491_vm2 = vcmp.lt.s32.totalorder %v1912_v27, 17  ;;  %v1921_v0 = vadd.s32 128, %v1912_v27  ;;  %vm568_vm3 = vcmp.lt.s32.totalorder %v1912_v27, 15 }
 0x108   : > { %2504 = vst [vmem:[#allocation10_spill] sm:$0xff] %v1836_v49  ;;  %vm2493_vm4 = vcmp.ge.s32.totalorder %v1912_v27, 16  ;;  %vm2495_vm6 = vcmp.lt.s32.totalorder %v1912_v27, 1  ;;  %vm2492_vm12 = vcmp.lt.s32.totalorder %v1912_v27, 127  ;;  %vm2490_vm13 = vcmp.lt.s32.totalorder %v1912_v27, 113 }
 0x109   : > { %v403_v49 = vand.u32 15, %v1921_v0  ;;  %vm880_vm14 = vcmp.lt.s32.totalorder %v1912_v27, 112  ;;  %vm407_vm15 = vcmp.lt.s32.totalorder %v1921_v0, 240 }
 0x10a   : > { %793 = vrot.lane.b32.xlu0 %v1674_v45, %s1521_s25  ;;  %941 = vrot.lane.b32.xlu1 %v1696_v56, %s1519_s22  ;;  %v1863_v11 = vpop.permute.xlu0 %894 }
 0x10b   : > { %v1844_v60 = vpop.permute.xlu1 %959  ;;  %vm1965_vm9 = vcmp.ge.s32.totalorder %v403_v49, 1  ;;  %vm1992_vm11 = vcmp.le.s32.totalorder %v403_v49, 14 }
 0x10c   : > { %vm2048_vm0 = vmand %vm407_vm15, %vm1965_vm9 }
 0x10e   : > { %420 = vrot.lane.b32.xlu0 %v1696_v56, %s1515_s16  ;;  %414 = vrot.lane.b32.xlu1 %v1710_v61, %s1515_s16 }
 0x10f   : > { %v1857_v9 = vpop.permute.xlu1 %967 }
 0x110   : > { %2507 = vst [vmem:[#allocation13_spill] sm:$0xff] %v1857_v9 }
 0x112   : > { %491 = vrot.lane.b32.xlu0 %v1696_v56, %s1514_s15  ;;  %485 = vrot.lane.b32.xlu1 %v1710_v61, %s1514_s15 }
 0x113   : > { %v1865_v13 = vpop.permute.xlu1 %971 }
 0x114   : > { %2508 = vst [vmem:[#allocation14_spill] sm:$0xff] %v1865_v13  ;;  %v402_v13 = vand.u32 15, %v1912_v27 }
 0x116   : > { %560 = vrot.lane.b32.xlu0 %v1696_v56, %s1516_s17  ;;  %554 = vrot.lane.b32.xlu1 %v1710_v61, %s1516_s17  ;;  %vm1930_vm5 = vcmp.ge.s32.totalorder %v402_v13, 1  ;;  %vm1951_vm7 = vcmp.le.s32.totalorder %v402_v13, 14 }
 0x117   : > { %v1873_v15 = vpop.permute.xlu1 %1009  ;;  %vm1959_vm8 = vmand %vm2493_vm4, %vm1930_vm5 }
 0x118   : > { %vm1974_vm10 = vmand %vm2493_vm4, %vm1951_vm7 }
 0x11a   : > { %631 = vrot.lane.b32.xlu0 %v1696_v56, %s1518_s21  ;;  %625 = vrot.lane.b32.xlu1 %v1710_v61, %s1518_s21 }
 0x11b   : > { %v1883_v20 = vpop.permute.xlu1 %1013 }
 0x11c   : > { %2510 = vst [vmem:[#allocation16_spill] sm:$0xff] %v1883_v20 }
 0x11e   : > { %732 = vrot.lane.b32.xlu0 %v1696_v56, %s1520_s23  ;;  %726 = vrot.lane.b32.xlu1 %v1710_v61, %s1520_s23 }
 0x122   : > { %801 = vrot.lane.b32.xlu0 %v1696_v56, %s1521_s25  ;;  %795 = vrot.lane.b32.xlu1 %v1710_v61, %s1521_s25 }
 0x126   : > { %866 = vrot.lane.b32.xlu0 %v1710_v61, %s1517_s20  ;;  %422 = vrot.lane.b32.xlu1 %v1754_v14, %s1515_s16 }
 0x12a   : > { %935 = vrot.lane.b32.xlu0 %v1710_v61, %s1519_s22  ;;  %493 = vrot.lane.b32.xlu1 %v1754_v14, %s1514_s15 }
 0x12e   : > { %874 = vrot.lane.b32.xlu0 %v1754_v14, %s1517_s20  ;;  %562 = vrot.lane.b32.xlu1 %v1754_v14, %s1516_s17 }
 0x132   : > { %943 = vrot.lane.b32.xlu0 %v1754_v14, %s1519_s22  ;;  %633 = vrot.lane.b32.xlu1 %v1754_v14, %s1518_s21 }
 0x136   : > { %487 = vrot.lane.b32.xlu0 %v1786_v28, %s1514_s15  ;;  %734 = vrot.lane.b32.xlu1 %v1754_v14, %s1520_s23 }
 0x13a   : > { %556 = vrot.lane.b32.xlu0 %v1786_v28, %s1516_s17  ;;  %803 = vrot.lane.b32.xlu1 %v1754_v14, %s1521_s25 }
 0x13e   : > { %627 = vrot.lane.b32.xlu0 %v1786_v28, %s1518_s21  ;;  %416 = vrot.lane.b32.xlu1 %v1786_v28, %s1515_s16 }
 0x142   : > { %937 = vrot.lane.b32.xlu0 %v1786_v28, %s1519_s22  ;;  %728 = vrot.lane.b32.xlu1 %v1786_v28, %s1520_s23 }
 0x146   : > { %805 = vrot.lane.b32.xlu0 %v1818_v43, %s1521_s25  ;;  %797 = vrot.lane.b32.xlu1 %v1786_v28, %s1521_s25 }
 0x14a   : > { %876 = vrot.lane.b32.xlu0 %v1818_v43, %s1517_s20  ;;  %868 = vrot.lane.b32.xlu1 %v1786_v28, %s1517_s20 }
 0x14e   : > { %489 = vrot.lane.b32.xlu0 %v1834_v53, %s1514_s15  ;;  %424 = vrot.lane.b32.xlu1 %v1818_v43, %s1515_s16 }
 0x152   : > { %870 = vrot.lane.b32.xlu0 %v1834_v53, %s1517_s20  ;;  %495 = vrot.lane.b32.xlu1 %v1818_v43, %s1514_s15 }
 0x156   : > { %1017 = vperm.xlu0 %1464, %v1584_v4   ;;  %564 = vrot.lane.b32.xlu1 %v1818_v43, %s1516_s17  ;;  %v1871_v4 = vpop.permute.xlu0 %902 }
 0x157   : > { %2509 = vst [vmem:[#allocation15_spill] sm:$0xff] %v1871_v4 }
 0x15a   : > { %738 = vrot.lane.b32.xlu0 %v1855_v6, %s1520_s23  ;;  %635 = vrot.lane.b32.xlu1 %v1818_v43, %s1518_s21  ;;  %v1881_v18 = vpop.permute.xlu0 %1005 }
 0x15e   : > { %807 = vrot.lane.b32.xlu0 %v1855_v6, %s1521_s25  ;;  %736 = vrot.lane.b32.xlu1 %v1818_v43, %s1520_s23 }
 0x162   : > { %947 = vrot.lane.b32.xlu0 %v1855_v6, %s1519_s22  ;;  %418 = vrot.lane.b32.xlu1 %v1834_v53, %s1515_s16 }
 0x166   : > { %558 = vrot.lane.b32.xlu1 %v1834_v53, %s1516_s17 }
 0x16a   : > { %629 = vrot.lane.b32.xlu1 %v1834_v53, %s1518_s21 }
 0x16c   : > { %v484_v22 = vpop.permute.xlu0 %483  ;;  %v413_v23 = vpop.permute.xlu1 %412 }
 0x16e   : > { %730 = vrot.lane.b32.xlu1 %v1834_v53, %s1520_s23 }
 0x170   : > { %v553_v29 = vpop.permute.xlu0 %552  ;;  %v1889_v30 = vpop.permute.xlu1 %864 }
 0x172   : > { %799 = vrot.lane.b32.xlu1 %v1834_v53, %s1521_s25 }
 0x174   : > { %v624_v31 = vpop.permute.xlu0 %623  ;;  %v1893_v34 = vpop.permute.xlu1 %933 }
 0x176   : > { %426 = vrot.lane.b32.xlu1 %v1855_v6, %s1515_s16 }
 0x178   : > { %v1897_v35 = vpop.permute.xlu0 %724  ;;  %v1899_v38 = vpop.permute.xlu1 %872 }
 0x17a   : > { %497 = vrot.lane.b32.xlu1 %v1855_v6, %s1514_s15 }
 0x17c   : > { %v1903_v39 = vpop.permute.xlu0 %793  ;;  %v1905_v44 = vpop.permute.xlu1 %941 }
 0x17e   : > { %566 = vrot.lane.b32.xlu1 %v1855_v6, %s1516_s17 }
 0x180   : > { %v421_v48 = vpop.permute.xlu0 %420  ;;  %v1909_v51 = vpop.permute.xlu1 %414 }
 0x181   : > { %v433_v4 = vsel %vm2491_vm2, %v421_v48, %v413_v23  ;;  %v429_v52 = vsel %vm2491_vm2, %v413_v23, %v421_v48  ;;  %v1385_v23 = vld [vmem:[%s2471_s4] ss:$0 sm:$0xff] }
 0x182   : > { %637 = vrot.lane.b32.xlu1 %v1855_v6, %s1518_s21  ;;  %v454_v13 = vmul.f32 %v1702_v58, %v429_v52 }
 0x184   : > { %v492_v57 = vpop.permute.xlu0 %491  ;;  %v1917_v1 = vpop.permute.xlu1 %485 }
 0x185   : > { %v504_v20 = vsel %vm499_vm1, %v492_v57, %v484_v22  ;;  %v500_v2 = vsel %vm499_vm1, %v484_v22, %v492_v57 }
 0x186   : > { %945 = vrot.lane.b32.xlu1 %v1818_v43, %s1519_s22  ;;  %v524_v21 = vmul.f32 %v1670_v41, %v504_v20  ;;  %v453_v20 = vmul.f32 %v1702_v58, %v433_v4 }
 0x188   : > { %v561_v9 = vpop.permute.xlu0 %560  ;;  %v1936_v54 = vpop.permute.xlu1 %554  ;;  %v536_v37 = vsel %vm2493_vm4, %v524_v21, 0.0 }
 0x189   : > { %v569_v10 = vsel %vm568_vm3, %v553_v29, %v561_v9  ;;  %v573_v63 = vsel %vm568_vm3, %v561_v9, %v553_v29 }
 0x18a   : > { %878 = vrot.lane.b32.xlu1 %v1855_v6, %s1517_s20  ;;  %v593_v22 = vmul.f32 %v1732_v7, %v573_v63  ;;  %v594_v57 = vmul.f32 %v1732_v7, %v569_v10  ;;  %v525_v63 = vmul.f32 %v1670_v41, %v500_v2  ;;  %v467_v41 = vsel %vm1959_vm8, %v453_v20, 0.0 }
 0x18b   : > { %v468_v10 = vsel %vm1965_vm9, %v454_v13, 0.0  ;;  %v544_v21 = vadd.f32 %v536_v37, %v467_v41 }
 0x18c   : > { %v632_v6 = vpop.permute.xlu0 %631  ;;  %v1979_v4 = vpop.permute.xlu1 %625  ;;  %v607_v2 = vsel %vm1974_vm10, %v593_v22, 0.0 }
 0x18d   : > { %v640_v58 = vsel %vm2495_vm6, %v624_v31, %v632_v6  ;;  %v644_v52 = vsel %vm2495_vm6, %v632_v6, %v624_v31  ;;  %v545_v31 = vadd.f32 %v525_v63, %v468_v10  ;;  %v615_v20 = vadd.f32 %v607_v2, %v544_v21 }
 0x18e   : > { %v664_v40 = vmul.f32 %v1734_v8, %v644_v52  ;;  %v665_v43 = vmul.f32 %v1734_v8, %v640_v58  ;;  %939 = vrot.lane.b32.xlu1 %v1834_v53, %s1519_s22  ;;  %v608_v8 = vsel %vm1992_vm11, %v594_v57, 0.0  ;;  %v708_v21 = vmul.f32 %v1758_v17, %v1674_v45 }
 0x18f   : > { %v616_v37 = vadd.f32 %v608_v8, %v545_v31  ;;  %v709_v8 = vmul.f32 %v1758_v17, %v1696_v56  ;;  %v885_v45 = vsel %vm880_vm14, %v1899_v38, %v1889_v30 }
 0x190   : > { %v733_v6 = vpop.permute.xlu0 %732  ;;  %v2005_v49 = vpop.permute.xlu1 %726  ;;  %v676_v58 = vsel %vm1930_vm5, %v664_v40, 0.0  ;;  %v677_v22 = vsel %vm1965_vm9, %v665_v43, 0.0 }
 0x191   : > { %v741_v52 = vsel %vm2492_vm12, %v1897_v35, %v733_v6  ;;  %v745_v13 = vsel %vm2492_vm12, %v733_v6, %v1897_v35  ;;  %v684_v57 = vadd.f32 %v676_v58, %v615_v20  ;;  %v685_v40 = vadd.f32 %v677_v22, %v616_v37 }
 0x192   : > { %v765_v2 = vmul.f32 %v1768_v19, %v741_v52  ;;  %v766_v35 = vmul.f32 %v1768_v19, %v745_v13  ;;  %v906_v52 = vmul.f32 %v1826_v47, %v885_v45 }
 0x193   : > { %v716_v31 = vadd.f32 %v708_v21, %v684_v57  ;;  %v717_v22 = vadd.f32 %v709_v8, %v685_v40 }
 0x194   : > { %v802_v63 = vpop.permute.xlu0 %801  ;;  %v2018_v41 = vpop.permute.xlu1 %795  ;;  %v777_v19 = vsel %vm1951_vm7, %v765_v2, 0.0  ;;  %v778_v17 = vsel %vm1992_vm11, %v766_v35, 0.0 }
 0x195   : > { %v810_v43 = vsel %vm2490_vm13, %v1903_v39, %v802_v63  ;;  %v814_v10 = vsel %vm2490_vm13, %v802_v63, %v1903_v39  ;;  %vm2494_vm13 = vcmp.lt.s32.totalorder %v1912_v27, 111  ;;  %v785_v37 = vadd.f32 %v777_v19, %v716_v31 }
 0x196   : > { %v834_v6 = vmul.f32 %v1792_v26, %v810_v43  ;;  %v835_v58 = vmul.f32 %v1792_v26, %v814_v10  ;;  %v881_v63 = vsel %vm880_vm14, %v1889_v30, %v1899_v38  ;;  %v950_v40 = vsel %vm2494_vm13, %v1893_v34, %v1905_v44 }
 0x197   : > { %v786_v2 = vadd.f32 %v778_v17, %v717_v22  ;;  %v954_v21 = vsel %vm2494_vm13, %v1905_v44, %v1893_v34  ;;  %v905_v31 = vmul.f32 %v1826_v47, %v881_v63  ;;  %v974_v34 = vmul.f32 %v1844_v60, %v950_v40 }
 0x198   : > { %v2036_v20 = vpop.permute.xlu0 %866  ;;  %v423_v39 = vpop.permute.xlu1 %422  ;;  %v848_v26 = vsel %vm1930_vm5, %v834_v6, 0.0  ;;  %v849_v13 = vsel %vm2048_vm0, %v835_v58, 0.0  ;;  %v918_v58 = vsel %vm407_vm15, %v906_v52, 0.0  ;;  %v975_v22 = vmul.f32 %v1844_v60, %v954_v21 }
 0x199   : > { %v856_v35 = vadd.f32 %v848_v26, %v785_v37  ;;  %v430_v30 = vsel %vm2491_vm2, %v1909_v51, %v423_v39  ;;  %v434_v38 = vsel %vm2491_vm2, %v423_v39, %v1909_v51  ;;  %v857_v8 = vadd.f32 %v849_v13, %v786_v2  ;;  %vm2101_vm2 = vmand %vm407_vm15, %vm1992_vm11 }
 0x19a   : > { %v455_v19 = vmul.f32 %v1666_v32, %v434_v38  ;;  %v456_v51 = vmul.f32 %v1666_v32, %v430_v30  ;;  %v988_v13 = vsel %vm1951_vm7, %v974_v34, 0.0 }
 0x19b   : > { %v925_v39 = vadd.f32 %v905_v31, %v856_v35  ;;  %v926_v26 = vadd.f32 %v918_v58, %v857_v8  ;;  %v710_v31 = vmul.f32 %v1780_v25, %v1710_v61  ;;  %v711_v58 = vmul.f32 %v1780_v25, %v1754_v14 }
 0x19c   : > { %v494_v57 = vpop.permute.xlu1 %493  ;;  %v2068_v43 = vpop.permute.xlu0 %935  ;;  %v469_v40 = vsel %vm1959_vm8, %v455_v19, 0.0 }
 0x19d   : > { %v505_v10 = vsel %vm499_vm1, %v494_v57, %v1917_v1  ;;  %v501_v6 = vsel %vm499_vm1, %v1917_v1, %v494_v57  ;;  %v996_v35 = vadd.f32 %v988_v13, %v925_v39 }
 0x19e   : > { %v526_v44 = vmul.f32 %v1712_v62, %v505_v10  ;;  %v527_v17 = vmul.f32 %v1712_v62, %v501_v6  ;;  %v989_v62 = vsel %vm2101_vm2, %v975_v22, 0.0 }
 0x19f   : > { %v997_v6 = vadd.f32 %v989_v62, %v926_v26 }
 0x1a0   : > { %v563_v45 = vpop.permute.xlu1 %562  ;;  %v875_v52 = vpop.permute.xlu0 %874  ;;  %v538_v57 = vsel %vm2493_vm4, %v526_v44, 0.0 }
 0x1a1   : > { %v570_v1 = vsel %vm568_vm3, %v1936_v54, %v563_v45  ;;  %v574_v60 = vsel %vm568_vm3, %v563_v45, %v1936_v54  ;;  %v470_v54 = vsel %vm1965_vm9, %v456_v51, 0.0  ;;  %v546_v30 = vadd.f32 %v538_v57, %v469_v40 }
 0x1a2   : > { %v596_v32 = vmul.f32 %v1704_v59, %v570_v1  ;;  %v595_v37 = vmul.f32 %v1704_v59, %v574_v60  ;;  %v547_v59 = vadd.f32 %v527_v17, %v470_v54  ;;  %v886_v39 = vsel %vm880_vm14, %v875_v52, %v2036_v20 }
 0x1a3   : > { %v2153_v60 = vadd.f32 %v1881_v18, %v996_v35  ;;  %v882_v40 = vsel %vm880_vm14, %v2036_v20, %v875_v52  ;;  %v908_v54 = vmul.f32 %v1863_v11, %v886_v39 }
 0x1a4   : > { %v634_v63 = vpop.permute.xlu1 %633  ;;  %v610_v2 = vsel %vm1992_vm11, %v596_v32, 0.0  ;;  %v609_v10 = vsel %vm1974_vm10, %v595_v37, 0.0  ;;  %v944_v19 = vpop.permute.xlu0 %943  ;;  %v2156_v32 = vadd.f32 %v1881_v18, %v997_v6 }
 0x1a5   : > { %v641_v21 = vsel %vm2495_vm6, %v1979_v4, %v634_v63  ;;  %v645_v38 = vsel %vm2495_vm6, %v634_v63, %v1979_v4  ;;  %v618_v34 = vadd.f32 %v610_v2, %v547_v59  ;;  %v617_v22 = vadd.f32 %v609_v10, %v546_v30 }
 0x1a6   : > { %v667_v8 = vmul.f32 %v1756_v16, %v641_v21  ;;  %v666_v44 = vmul.f32 %v1756_v16, %v645_v38  ;;  %v955_v57 = vsel %vm2494_vm13, %v944_v19, %v2068_v43  ;;  %v1028_v21 = vadd.f32 %v2156_v32, %v2153_v60 }
 0x1a7   : > { %v977_v30 = vmul.f32 %v1850_v5, %v955_v57  ;;  %v907_v38 = vmul.f32 %v1863_v11, %v882_v40  ;;  %v920_v6 = vsel %vm407_vm15, %v908_v54, 0.0 }
 0x1a8   : > { %v735_v45 = vpop.permute.xlu1 %734  ;;  %v679_v51 = vsel %vm1965_vm9, %v667_v8, 0.0  ;;  %v678_v14 = vsel %vm1930_vm5, %v666_v44, 0.0 }
 0x1a9   : > { %v742_v4 = vsel %vm2492_vm12, %v2005_v49, %v735_v45  ;;  %v746_v61 = vsel %vm2492_vm12, %v735_v45, %v2005_v49  ;;  %v687_v25 = vadd.f32 %v679_v51, %v618_v34  ;;  %v686_v17 = vadd.f32 %v678_v14, %v617_v22  ;;  %v488_v51 = vpop.permute.xlu0 %487 }
 0x1aa   : > { %v767_v16 = vmul.f32 %v1778_v24, %v742_v4  ;;  %v768_v1 = vmul.f32 %v1778_v24, %v746_v61  ;;  %v951_v49 = vsel %vm2494_vm13, %v2068_v43, %v944_v19  ;;  %vm2527_vm12 = vcmp.lt.s32.totalorder %v1912_v27, 113 }
 0x1ab   : > { %v719_v26 = vadd.f32 %v711_v58, %v687_v25  ;;  %v718_v63 = vadd.f32 %v710_v31, %v686_v17  ;;  %vm2528_vm4 = vmmov %vm2527_vm12  ;;  %v976_v35 = vmul.f32 %v1850_v5, %v951_v49  ;;  %v991_v34 = vsel %vm2101_vm2, %v977_v30, 0.0 }
 0x1ac   : > { %v779_v37 = vsel %vm1951_vm7, %v767_v16, 0.0  ;;  %v780_v24 = vsel %vm1992_vm11, %v768_v1, 0.0  ;;  %v804_v13 = vpop.permute.xlu1 %803 }
 0x1ad   : > { %v811_v18 = vsel %vm2527_vm12, %v2018_v41, %v804_v13  ;;  %v815_v62 = vsel %vm2528_vm4, %v804_v13, %v2018_v41  ;;  %v787_v43 = vadd.f32 %v779_v37, %v718_v63  ;;  %v788_v10 = vadd.f32 %v780_v24, %v719_v26  ;;  %v557_v25 = vpop.permute.xlu0 %556 }
 0x1ae   : > { %v836_v2 = vmul.f32 %v1802_v36, %v811_v18  ;;  %v837_v59 = vmul.f32 %v1802_v36, %v815_v62  ;;  %v990_v5 = vsel %vm1951_vm7, %v976_v35, 0.0  ;;  %vm2529_vm4 = vcmp.lt.s32.totalorder %v1912_v27, 17 }
 0x1af   : > { %vm2530_vm12 = vmmov %vm2529_vm4 }
 0x1b0   : > { %v850_v41 = vsel %vm1930_vm5, %v836_v2, 0.0  ;;  %v851_v20 = vsel %vm2048_vm0, %v837_v59, 0.0  ;;  %v417_v52 = vpop.permute.xlu1 %416 }
 0x1b1   : > { %v858_v8 = vadd.f32 %v850_v41, %v787_v43  ;;  %v859_v36 = vadd.f32 %v851_v20, %v788_v10  ;;  %v628_v1 = vpop.permute.xlu0 %627 }
 0x1b2   : > { %1029 = vadd.xlane.f32.xlu1 %v1028_v21 }
 0x1b3   : > { %v927_v31 = vadd.f32 %v907_v38, %v858_v8  ;;  %v928_v58 = vadd.f32 %v920_v6, %v859_v36 }
 0x1b4   : > { %v729_v44 = vpop.permute.xlu1 %728 }
 0x1b5   : > { %v998_v45 = vadd.f32 %v990_v5, %v927_v31  ;;  %v999_v22 = vadd.f32 %v991_v34, %v928_v58  ;;  %v2203_v49 = vpop.permute.xlu0 %937 }
 0x1b7   : > { %v2196_v19 = vadd.f32 %v1873_v15, %v998_v45  ;;  %v2199_v11 = vadd.f32 %v1873_v15, %v999_v22 }
 0x1b8   : > { %v798_v4 = vpop.permute.xlu1 %797 }
 0x1b9   : > { %v1031_v61 = vadd.f32 %v2199_v11, %v2196_v19  ;;  %v806_v37 = vpop.permute.xlu0 %805 }
 0x1bb   : > { %1032 = vadd.xlane.f32.xlu0 %v1031_v61 }
 0x1bc   : > { %v869_v14 = vpop.permute.xlu1 %868 }
 0x1bd   : > { %v877_v15 = vpop.permute.xlu0 %876 }
 0x1c0   : > { %v425_v16 = vpop.permute.xlu1 %424 }
 0x1c1   : > { %v490_v18 = vpop.permute.xlu0 %489  ;;  %v435_v40 = vsel %vm2529_vm4, %v425_v16, %v417_v52  ;;  %v431_v2 = vsel %vm2530_vm12, %v417_v52, %v425_v16  ;;  %vm2531_vm4 = vcmp.ge.s32.totalorder %v1912_v27, 16  ;;  %vm2532_vm12 = vcmp.lt.s32.totalorder %v1912_v27, 127 }
 0x1c2   : > { %v457_v35 = vmul.f32 %v1684_v50, %v435_v40  ;;  %v458_v52 = vmul.f32 %v1684_v50, %v431_v2  ;;  %vm2534_vm13 = vmmov %vm2532_vm12 }
 0x1c4   : > { %v496_v39 = vpop.permute.xlu1 %495  ;;  %v471_v5 = vsel %vm1959_vm8, %v457_v35, 0.0 }
 0x1c5   : > { %v506_v63 = vsel %vm499_vm1, %v496_v39, %v488_v51  ;;  %v502_v10 = vsel %vm499_vm1, %v488_v51, %v496_v39  ;;  %v2232_v8 = vpop.permute.xlu0 %870 }
 0x1c6   : > { %v528_v59 = vmul.f32 %v1690_v55, %v506_v63  ;;  %v529_v36 = vmul.f32 %v1690_v55, %v502_v10 }
 0x1c8   : > { %v565_v17 = vpop.permute.xlu1 %564  ;;  %v540_v6 = vsel %vm2531_vm4, %v528_v59, 0.0  ;;  %vm2533_vm4 = vcmp.lt.s32.totalorder %v1912_v27, 113  ;;  %v712_v59 = vmul.f32 %v1796_v33, %v1786_v28 }
 0x1c9   : > { %v575_v54 = vsel %vm568_vm3, %v565_v17, %v557_v25  ;;  %v571_v43 = vsel %vm568_vm3, %v557_v25, %v565_v17  ;;  %v548_v45 = vadd.f32 %v540_v6, %v471_v5 }
 0x1ca   : > { %v597_v30 = vmul.f32 %v1726_v3, %v575_v54  ;;  %v598_v38 = vmul.f32 %v1726_v3, %v571_v43  ;;  %v472_v3 = vsel %vm1965_vm9, %v458_v52, 0.0  ;;  %v2536_v43 = vld [vmem:[#allocation8_spill] sm:$0xff] }
 0x1cb   : > { %v549_v22 = vadd.f32 %v529_v36, %v472_v3  ;;  %v713_v10 = vmul.f32 %v1796_v33, %v2536_v43  ;;  %v2543_v3 = vld [vmem:[#allocation10_spill] sm:$0xff] }
 0x1cc   : > { %v636_v26 = vpop.permute.xlu1 %635  ;;  %v611_v34 = vsel %vm1974_vm10, %v597_v30, 0.0  ;;  %v612_v55 = vsel %vm1992_vm11, %v598_v38, 0.0 }
 0x1cd   : > { %v646_v21 = vsel %vm2495_vm6, %v636_v26, %v628_v1  ;;  %v642_v41 = vsel %vm2495_vm6, %v628_v1, %v636_v26  ;;  %v619_v61 = vadd.f32 %v611_v34, %v548_v45  ;;  %v812_v1 = vsel %vm2533_vm4, %v798_v4, %v806_v37  ;;  %vm2535_vm6 = vmmov %vm2533_vm4 }
 0x1ce   : > { %v668_v31 = vmul.f32 %v1746_v12, %v646_v21  ;;  %v669_v58 = vmul.f32 %v1746_v12, %v642_v41  ;;  %v620_v39 = vadd.f32 %v612_v55, %v549_v22  ;;  %v816_v63 = vsel %vm2535_vm6, %v806_v37, %v798_v4  ;;  %v2537_v21 = vld [vmem:[#allocation7_spill] sm:$0xff]  ;;  %vm2547_vm4 = vmmov %vm2532_vm12 }
 0x1cf   : > { %v838_v35 = vmul.f32 %v2537_v21, %v812_v1  ;;  %v839_v4 = vmul.f32 %v2537_v21, %v816_v63  ;;  %v883_v37 = vsel %vm880_vm14, %v869_v14, %v877_v15  ;;  %v887_v41 = vsel %vm880_vm14, %v877_v15, %v869_v14  ;;  %v2541_v14 = vld [vmem:[#allocation3_spill] sm:$0xff] }
 0x1d0   : > { %v737_v24 = vpop.permute.xlu1 %736  ;;  %v680_v51 = vsel %vm1930_vm5, %v668_v31, 0.0  ;;  %v681_v25 = vsel %vm1965_vm9, %v669_v58, 0.0  ;;  %vm2539_vm6 = vcmp.lt.s32.totalorder %v1912_v27, 17  ;;  %v2542_v58 = vld [vmem:[#allocation12_spill] sm:$0xff]  ;;  %v909_v22 = vmul.f32 %v2543_v3, %v883_v37 }
 0x1d1   : > { %v743_v16 = vsel %vm2532_vm12, %v729_v44, %v737_v24  ;;  %v747_v17 = vsel %vm2534_vm13, %v737_v24, %v729_v44  ;;  %v688_v40 = vadd.f32 %v680_v51, %v619_v61  ;;  %v689_v54 = vadd.f32 %v681_v25, %v620_v39  ;;  %v2538_v44 = vld [vmem:[#allocation6_spill] sm:$0xff]  ;;  %vm2540_vm13 = vmmov %vm2539_vm6 }
 0x1d2   : > { %v769_v2 = vmul.f32 %v1816_v42, %v743_v16  ;;  %v770_v30 = vmul.f32 %v1816_v42, %v747_v17  ;;  %v2272_v24 = vmul.f32 %v2538_v44, %v1834_v53  ;;  %v715_v5 = vmul.f32 %v2538_v44, %v2542_v58  ;;  %v2544_v51 = vld [vmem:[#allocation2_spill] sm:$0xff]  ;;  %v2554_v58 = vld [vmem:[#allocation11_spill] sm:$0xff] }
 0x1d3   : > { %v720_v38 = vadd.f32 %v712_v59, %v688_v40  ;;  %v721_v36 = vadd.f32 %v713_v10, %v689_v54  ;;  %v852_v34 = vsel %vm1930_vm5, %v838_v35, 0.0  ;;  %v853_v55 = vsel %vm2048_vm0, %v839_v4, 0.0  ;;  %v2546_v54 = vld [vmem:[#allocation4_spill] sm:$0xff] }
 0x1d4   : > { %v419_v13 = vpop.permute.xlu1 %418  ;;  %v781_v6 = vsel %vm1951_vm7, %v769_v2, 0.0  ;;  %v782_v45 = vsel %vm1992_vm11, %v770_v30, 0.0 }
 0x1d5   : > { %v2251_v12 = vpop.permute.xlu0 %1017  ;;  %v789_v16 = vadd.f32 %v781_v6, %v720_v38 }
 0x1d8   : > { %v2205_v57 = vpop.permute.xlu1 %558 }
 0x1d9   : > { %v739_v28 = vpop.permute.xlu0 %738 }
 0x1dc   : > { %v2209_v62 = vpop.permute.xlu1 %629 }
 0x1dd   : > { %v808_v63 = vpop.permute.xlu0 %807 }
 0x1e0   : > { %v2228_v20 = vpop.permute.xlu1 %730 }
 0x1e1   : > { %v744_v10 = vsel %vm2532_vm12, %v2228_v20, %v739_v28 }
 0x1e4   : > { %v2243_v50 = vpop.permute.xlu1 %799 }
 0x1e8   : > { %v427_v26 = vpop.permute.xlu1 %426 }
 0x1e9   : > { %v432_v33 = vsel %vm2539_vm6, %v419_v13, %v427_v26  ;;  %v436_v42 = vsel %vm2540_vm13, %v427_v26, %v419_v13  ;;  %v910_v13 = vmul.f32 %v2543_v3, %v887_v41  ;;  %v790_v26 = vadd.f32 %v782_v45, %v721_v36 }
 0x1ea   : > { %v460_v61 = vmul.f32 %v2544_v51, %v432_v33  ;;  %vm2549_vm6 = vcmp.lt.s32.totalorder %v1912_v27, 1  ;;  %v2551_v33 = vld [vmem:[#allocation5_spill] sm:$0xff] }
 0x1eb   : > { %v922_v43 = vsel %vm407_vm15, %v910_v13, 0.0  ;;  %vm2550_vm13 = vmmov %vm2549_vm6  ;;  %v861_v38 = vadd.f32 %v853_v55, %v790_v26 }
 0x1ec   : > { %v498_v52 = vpop.permute.xlu1 %497  ;;  %v474_v30 = vsel %vm1965_vm9, %v460_v61, 0.0  ;;  %v2557_v61 = vld [vmem:[#allocation13_spill] sm:$0xff] }
 0x1ed   : > { %v507_v53 = vsel %vm499_vm1, %v498_v52, %v490_v18  ;;  %v503_v31 = vsel %vm499_vm1, %v490_v18, %v498_v52  ;;  %v459_v18 = vmul.f32 %v2544_v51, %v436_v42  ;;  %vm2545_vm1 = vcmp.ge.s32.totalorder %v1912_v27, 16 }
 0x1ee   : > { %v530_v15 = vmul.f32 %v2541_v14, %v507_v53  ;;  %v531_v1 = vmul.f32 %v2541_v14, %v503_v31  ;;  %v2552_v53 = vld [vmem:[#allocation9_spill] sm:$0xff]  ;;  %v930_v26 = vadd.f32 %v922_v43, %v861_v38 }
 0x1ef   : > { %v473_v35 = vsel %vm1959_vm8, %v459_v18, 0.0  ;;  %v771_v36 = vmul.f32 %v2552_v53, %v744_v10 }
 0x1f0   : > { %v567_v25 = vpop.permute.xlu1 %566  ;;  %v542_v40 = vsel %vm2545_vm1, %v530_v15, 0.0  ;;  %v551_v52 = vadd.f32 %v531_v1, %v474_v30 }
 0x1f1   : > { %v572_v39 = vsel %vm568_vm3, %v2205_v57, %v567_v25  ;;  %v576_v17 = vsel %vm568_vm3, %v567_v25, %v2205_v57  ;;  %v748_v57 = vsel %vm2547_vm4, %v739_v28, %v2228_v20  ;;  %vm2548_vm3 = vcmp.lt.s32.totalorder %v1912_v27, 113 }
 0x1f2   : > { %v599_v2 = vmul.f32 %v2546_v54, %v576_v17  ;;  %v600_v59 = vmul.f32 %v2546_v54, %v572_v39  ;;  %v813_v21 = vsel %vm2548_vm3, %v2243_v50, %v808_v63  ;;  %v550_v41 = vadd.f32 %v542_v40, %v473_v35  ;;  %vm2553_vm8 = vmmov %vm2548_vm3 }
 0x1f3   : > { %v860_v28 = vadd.f32 %v852_v34, %v789_v16  ;;  %v817_v6 = vsel %vm2553_vm8, %v808_v63, %v2243_v50  ;;  %v772_v15 = vmul.f32 %v2552_v53, %v748_v57  ;;  %v840_v3 = vmul.f32 %v2554_v58, %v813_v21 }
 0x1f4   : > { %v613_v44 = vsel %vm1974_vm10, %v599_v2, 0.0  ;;  %v614_v4 = vsel %vm1992_vm11, %v600_v59, 0.0  ;;  %v638_v37 = vpop.permute.xlu1 %637  ;;  %vm2555_vm10 = vcmp.lt.s32.totalorder %v1912_v27, 111  ;;  %v841_v18 = vmul.f32 %v2554_v58, %v817_v6 }
 0x1f5   : > { %v643_v20 = vsel %vm2549_vm6, %v2209_v62, %v638_v37  ;;  %v647_v9 = vsel %vm2550_vm13, %v638_v37, %v2209_v62  ;;  %v621_v31 = vadd.f32 %v613_v44, %v550_v41  ;;  %v622_v14 = vadd.f32 %v614_v4, %v551_v52  ;;  %vm2556_vm1 = vmmov %vm2555_vm10  ;;  %v948_v44 = vpop.permute.xlu0 %947  ;;  %v2559_v41 = vld [vmem:[#allocation16_spill] sm:$0xff] }
 0x1f6   : > { %v670_v42 = vmul.f32 %v2551_v33, %v647_v9  ;;  %v671_v48 = vmul.f32 %v2551_v33, %v643_v20  ;;  %v929_v1 = vadd.f32 %v909_v22, %v860_v28  ;;  %v783_v29 = vsel %vm1951_vm7, %v771_v36, 0.0  ;;  %v2562_v9 = vld [vmem:[#allocation14_spill] sm:$0xff] }
 0x1f7   : > { %v784_v63 = vsel %vm1992_vm11, %v772_v15, 0.0  ;;  %v855_v46 = vsel %vm2048_vm0, %v841_v18, 0.0  ;;  %vm1213_vm11 = vcmask 261120  }
 0x1f8   : > { %v682_v62 = vsel %vm1930_vm5, %v670_v42, 0.0  ;;  %v683_v34 = vsel %vm1965_vm9, %v671_v48, 0.0  ;;  %v946_v13 = vpop.permute.xlu1 %945  ;;  %vm2561_vm9 = vmmov %vm2556_vm1 }
 0x1f9   : > { %v690_v45 = vadd.f32 %v682_v62, %v621_v31  ;;  %v691_v55 = vadd.f32 %v683_v34, %v622_v14  ;;  %v952_v51 = vsel %vm2555_vm10, %v2203_v49, %v946_v13  ;;  %v956_v50 = vsel %vm2556_vm1, %v946_v13, %v2203_v49 }
 0x1fa   : > { %v978_v25 = vmul.f32 %v2557_v61, %v952_v51  ;;  %v979_v16 = vmul.f32 %v2557_v61, %v956_v50  ;;  %v854_v49 = vsel %vm1930_vm5, %v840_v3, 0.0  ;;  %vm2560_vm5 = vmmov %vm2556_vm1  ;;  %v1488_v51 = vld [vmem:[%s2470_s3 + $0x10] sm:$0xff] }
 0x1fb   : > { %v722_v39 = vadd.f32 %v2272_v24, %v690_v45  ;;  %v723_v17 = vadd.f32 %v715_v5, %v691_v55  ;;  %v2558_v5 = vld [vmem:[#allocation15_spill] sm:$0xff]  ;;  %v2420_v45 = vld [vmem:[%s2470_s3] sm:$0xff] }
 0x1fc   : > { %v992_v40 = vsel %vm1951_vm7, %v978_v25, 0.0  ;;  %v993_v54 = vsel %vm2101_vm2, %v979_v16, 0.0  ;;  %v879_v22 = vpop.permute.xlu1 %878 }
 0x1fd   : > { %v791_v2 = vadd.f32 %v783_v29, %v722_v39  ;;  %v792_v59 = vadd.f32 %v784_v63, %v723_v17  ;;  %v884_v24 = vsel %vm880_vm14, %v2232_v8, %v879_v22  ;;  %v888_v7 = vsel %vm880_vm14, %v879_v22, %v2232_v8  ;;  %v1489_v39 = vld [vmem:[%s2470_s3 + $0x18] sm:$0xff] }
 0x1fe   : > { %v912_v43 = vmul.f32 %v2558_v5, %v888_v7  ;;  %v1000_v10 = vadd.f32 %v992_v40, %v929_v1  ;;  %v1001_v57 = vadd.f32 %v993_v54, %v930_v26  ;;  %v911_v30 = vmul.f32 %v2558_v5, %v884_v24 }
 0x1ff   : > { %v862_v21 = vadd.f32 %v854_v49, %v791_v2  ;;  %v863_v35 = vadd.f32 %v855_v46, %v792_v59  ;;  %v2563_v59 = vlaneseq }
 0x200   : > { %v924_v4 = vsel %vm407_vm15, %v912_v43, 0.0  ;;  %v940_v37 = vpop.permute.xlu1 %939  ;;  %v2383_v52 = vadd.f32 %v2559_v41, %v1000_v10  ;;  %v2386_v8 = vadd.f32 %v2559_v41, %v1001_v57 }
 0x201   : > { %v953_v56 = vsel %vm2560_vm5, %v940_v37, %v948_v44  ;;  %v957_v20 = vsel %vm2561_vm9, %v948_v44, %v940_v37  ;;  %v931_v33 = vadd.f32 %v911_v30, %v862_v21  ;;  %v932_v42 = vadd.f32 %v924_v4, %v863_v35 }
 0x202   : > { %v980_v28 = vmul.f32 %v2562_v9, %v953_v56  ;;  %v981_v38 = vmul.f32 %v2562_v9, %v957_v20  ;;  %v1034_v0 = vadd.f32 %v2386_v8, %v2383_v52  ;;  %v1075_v24 = vshrl.u32 %v2563_v59, 7 }
 0x204   : > { %v994_v48 = vsel %vm1951_vm7, %v980_v28, 0.0  ;;  %v995_v53 = vsel %vm2101_vm2, %v981_v38, 0.0  ;;  %1035 = vadd.xlane.f32.xlu0 %v1034_v0  ;;  %vm1049_vm2 = vcmask 138312   ;;  %v1076_v43 = vsub.s32 0, %v1075_v24 }
 0x205   : > { %v1002_v36 = vadd.f32 %v994_v48, %v931_v33  ;;  %v1003_v6 = vadd.f32 %v995_v53, %v932_v42  ;;  %vm1102_vm7 = vcmask 64512   ;;  %v1524_v42 = vmov 27  }
 0x206   : > { %1467 = vset.pattern.permute.xlu1 %v1524_v42  ;;  %1466 = vset.pattern.permute.xlu0 %v1524_v42 }
 0x207   : > { %v2401_v27 = vadd.f32 %v2251_v12, %v1002_v36  ;;  %v2404_v31 = vadd.f32 %v2251_v12, %v1003_v6  ;;  %v2414_v12 = vld [vmem:[%s2470_s3 + $0x8] sm:$0xff] }
 0x209   : > { %v1037_v14 = vadd.f32 %v2404_v31, %v2401_v27 }
 0x20b   : > { %1038 = vadd.xlane.f32.xlu1 %v1037_v14 }
 0x21a   : > { %1069 = vrot.lane.b32.xlu0 %v1385_v23, %s1522_s28 }
 0x23f   : > { %v1030_v15 = vpop.xlane.xlu1 %1029 }
 0x240   : > { %v1041_v3 = vmul.f32 0.00390625, %v1030_v15 }
 0x242   : > { %v1045_v55 = vmul.f32 %v2420_v45, %v1041_v3 }
 0x244   : > { %v1050_v25 = vsel %vm1049_vm2, %v1045_v55, 0.0 }
 0x248   : > { %v1033_v47 = vpop.xlane.xlu0 %1032 }
 0x249   : > { %v1042_v58 = vmul.f32 0.00390625, %v1033_v47 }
 0x24b   : > { %v1046_v13 = vmul.f32 %v2414_v12, %v1042_v58 }
 0x24d   : > { %v1051_v18 = vsel %vm1049_vm2, %v1046_v13, 0.0 }
 0x24e   : > { %v1052_v29 = vadd.f32 %v1051_v18, %v1050_v25 }
 0x291   : > { %v1036_v62 = vpop.xlane.xlu0 %1035 }
 0x292   : > { %v1043_v34 = vmul.f32 0.00390625, %v1036_v62 }
 0x294   : > { %v1047_v50 = vmul.f32 %v1488_v51, %v1043_v34 }
 0x295   : > { %v1070_v46 = vpop.permute.xlu0 %1069 }
 0x296   : > { %v1053_v16 = vsel %vm1049_vm2, %v1047_v50, 0.0 }
 0x297   : > { %v1054_v26 = vadd.f32 %v1053_v16, %v1052_v29 }
 0x298   : > { %v1039_v61 = vpop.xlane.xlu1 %1038 }
 0x299   : > { %v1044_v1 = vmul.f32 0.00390625, %v1039_v61 }
 0x29b   : > { %v1048_v17 = vmul.f32 %v1489_v39, %v1044_v1 }
 0x29d   : > { %v1055_v63 = vsel %vm1049_vm2, %v1048_v17, 0.0 }
 0x29e   : > { %v1056_v49 = vadd.f32 %v1055_v63, %v1054_v26  ;;  %v1525_v26 = vmov 28  }
 0x2a0   : > { %v1057_v40 = vrot.slane %v1056_v49, 4 }
 0x2a2   : > { %v1058_v54 = vadd.f32 %v1057_v40, %v1056_v49 }
 0x2a4   : > { %v1059_v22 = vrot.slane %v1058_v54, 2 }
 0x2a6   : > { %v1060_v2 = vadd.f32 %v1059_v22, %v1058_v54 }
 0x2a8   : > { %v1061_v7 = vrot.slane %v1060_v2, 1 }
 0x2aa   : > { %v1062_v5 = vadd.f32 %v1061_v7, %v1060_v2 }
 0x2ac   : > { %v1072_v10 = vadd.f32 %v1070_v46, %v1062_v5 }
 0x2ae   : > { %v1073_v57 = vmax.f32 %v1072_v10, 0.0 }
 0x2b0   : > { %v1077_v21 = vrot.slane %v1073_v57, %v1076_v43 }
 0x2b2   : > { %1079 = vrot.lane.b32.xlu1 %v1077_v21, %s1523_s13 }
 0x324   : > { %v1080_v35 = vpop.permute.xlu1 %1079 }
 0x325   : > { %v1082_v30 = vmul.f32 %v2420_v45, %v1080_v35  ;;  %v1083_v44 = vmul.f32 %v2414_v12, %v1080_v35  ;;  %v1084_v4 = vmul.f32 %v1488_v51, %v1080_v35  ;;  %v1085_v37 = vmul.f32 %v1489_v39, %v1080_v35 }
 0x327   : > { %1092 = vrot.lane.b32.xlu0 %v1083_v44, %s1519_s22  ;;  %1090 = vrot.lane.b32.xlu1 %v1082_v30, %s1519_s22 }
 0x32b   : > { %1096 = vrot.lane.b32.xlu0 %v1085_v37, %s1519_s22  ;;  %1094 = vrot.lane.b32.xlu1 %v1084_v4, %s1519_s22  ;;  %s224_s22 = scalar_lea.vmem %s2472_s5, %s1394_s24 }
 0x399   : > { %v1093_v41 = vpop.permute.xlu0 %1092  ;;  %v1091_v56 = vpop.permute.xlu1 %1090 }
 0x39a   : > { %v1106_v20 = vsel %vm1102_vm7, %v1093_v41, 0.0  ;;  %v1103_v9 = vsel %vm1102_vm7, %v1091_v56, 0.0 }
 0x39b   : > { %1107 = vadd.xlane.f32.xlu0 %v1106_v20  ;;  %1104 = vadd.xlane.f32.xlu1 %v1103_v9 }
 0x39d   : > { %v1097_v28 = vpop.permute.xlu0 %1096  ;;  %v1095_v38 = vpop.permute.xlu1 %1094 }
 0x39e   : > { %v1112_v0 = vsel %vm1102_vm7, %v1097_v28, 0.0  ;;  %v1109_v33 = vsel %vm1102_vm7, %v1095_v38, 0.0 }
 0x39f   : > { %1113 = vadd.xlane.f32.xlu1 %v1112_v0  ;;  %1110 = vadd.xlane.f32.xlu0 %v1109_v33 }
 0x428   : > { %v1108_v48 = vpop.xlane.xlu0 %1107  ;;  %v1105_v53 = vpop.xlane.xlu1 %1104 }
 0x429   : > { %v1116_v36 = vadd.f32 %v2414_v12, %v1108_v48  ;;  %v1115_v6 = vadd.f32 %v2420_v45, %v1105_v53 }
 0x42b   : > { %v1387_v14 = vmul.f32 -1.442695, %v1116_v36  ;;  %v1386_v23 = vmul.f32 -1.442695, %v1115_v6 }
 0x42c   : > { %v1111_v47 = vpop.xlane.xlu0 %1110  ;;  %v1114_v15 = vpop.xlane.xlu1 %1113 }
 0x42d   : > { %1470 = vpow2.f32 %v1387_v14  ;;  %v1117_v58 = vadd.f32 %v1488_v51, %v1111_v47  ;;  %v1118_v3 = vadd.f32 %v1489_v39, %v1114_v15 }
 0x42e   : > { %1472 = vpow2.f32 %v1386_v23 }
 0x42f   : > { %v1388_v62 = vmul.f32 -1.442695, %v1117_v58  ;;  %v1389_v34 = vmul.f32 -1.442695, %v1118_v3 }
 0x431   : > { %1474 = vpow2.f32 %v1388_v62 }
 0x432   : > { %1476 = vpow2.f32 %v1389_v34 }
 0x437   : > { %v1471_v13 = vpop.eup %1470 }
 0x438   : > { %v1473_v55 = vpop.eup %1472  ;;  %v1132_v50 = vadd.f32 1.0, %v1471_v13 }
 0x439   : > { %v1131_v18 = vadd.f32 1.0, %v1473_v55 }
 0x43a   : > { %1478 = vrcp.f32 %v1132_v50 }
 0x43b   : > { %v1475_v61 = vpop.eup %1474  ;;  %1480 = vrcp.f32 %v1131_v18 }
 0x43c   : > { %v1477_v25 = vpop.eup %1476  ;;  %v1133_v16 = vadd.f32 1.0, %v1475_v61 }
 0x43d   : > { %v1134_v1 = vadd.f32 1.0, %v1477_v25  ;;  %v1211_v25 = vld [vmem:[%s2469_s2] sm:$0xff] }
 0x43e   : > { %1482 = vrcp.f32 %v1133_v16  ;;  %v2564_v16 = vmov 0.0  }
 0x43f   : > { %1484 = vrcp.f32 %v1134_v1  ;;  %v1212_v1 = vld [vmem:[%s2469_s2 + $0x8] sm:$0xff] }
 0x444   : > { %v1479_v29 = vpop.eup %1478 }
 0x445   : > { %v1481_v51 = vpop.eup %1480  ;;  %1150 = vperm.xlu1 %1467, %v1479_v29  }
 0x446   : > { %1145 = vperm.xlu0 %1466, %v1481_v51  }
 0x448   : > { %v1483_v39 = vpop.eup %1482 }
 0x449   : > { %1155 = vperm.xlu1 %1467, %v1483_v39   ;;  %v1485_v17 = vpop.eup %1484  ;;  %v1490_v39 = vld [vmem:[%s1591_s29] sm:$0xff] }
 0x44a   : > { %1469 = vset.pattern.permute.xlu0 %v1525_v26 }
 0x44d   : > { %1160 = vperm.xlu1 %1467, %v1485_v17  }
 0x451   : > { %1468 = vset.pattern.permute.xlu1 %v1525_v26 }
 0x452   : > { %1302 = vperm.xlu1 %1468, %v2420_v45  }
 0x456   : > { %1306 = vperm.xlu1 %1468, %v2414_v12  }
 0x4c4   : > { %v1151_v63 = vpop.permute.xlu1 %1150 }
 0x4c5   : > { %v1146_v49 = vpop.permute.xlu0 %1145  ;;  %v1165_v40 = vmul.f32 %v1151_v63, %v2196_v19  ;;  %v1166_v54 = vmul.f32 %v1151_v63, %v2199_v11  ;;  %v1491_v63 = vld [vmem:[%s1591_s29 + $0x8] sm:$0xff] }
 0x4c6   : > { %v1163_v22 = vmul.f32 %v1146_v49, %v2153_v60  ;;  %v1164_v2 = vmul.f32 %v1146_v49, %v2156_v32 }
 0x4c7   : > { %v1173_v59 = vadd.f32 3.0, %v1165_v40  ;;  %v1174_v24 = vadd.f32 3.0, %v1166_v54 }
 0x4c8   : > { %v1171_v7 = vadd.f32 3.0, %v1163_v22  ;;  %v1172_v46 = vadd.f32 3.0, %v1164_v2  ;;  %v1156_v5 = vpop.permute.xlu1 %1155 }
 0x4c9   : > { %v1181_v43 = vmax.f32 %v1173_v59, 0.0  ;;  %v1182_v10 = vmax.f32 %v1174_v24, 0.0  ;;  %v1167_v45 = vmul.f32 %v1156_v5, %v2383_v52  ;;  %v1168_v12 = vmul.f32 %v1156_v5, %v2386_v8 }
 0x4ca   : > { %v1179_v57 = vmax.f32 %v1171_v7, 0.0  ;;  %v1180_v21 = vmax.f32 %v1172_v46, 0.0  ;;  %v1493_v46 = vld [vmem:[%s1591_s29 + $0x18] sm:$0xff] }
 0x4cb   : > { %v1189_v19 = vmin.f32 %v1181_v43, 6.0  ;;  %v1175_v35 = vadd.f32 3.0, %v1167_v45  ;;  %v1176_v11 = vadd.f32 3.0, %v1168_v12  ;;  %v1190_v30 = vmin.f32 %v1182_v10, 6.0 }
 0x4cc   : > { %v1187_v60 = vmin.f32 %v1179_v57, 6.0  ;;  %v1188_v44 = vmin.f32 %v1180_v21, 6.0  ;;  %v1161_v32 = vpop.permute.xlu1 %1160 }
 0x4cd   : > { %v1197_v4 = vmul.f32 %v1189_v19, %v1165_v40  ;;  %v1183_v37 = vmax.f32 %v1175_v35, 0.0  ;;  %v1184_v41 = vmax.f32 %v1176_v11, 0.0  ;;  %v1169_v56 = vmul.f32 %v1161_v32, %v2401_v27 }
 0x4ce   : > { %v1195_v20 = vmul.f32 %v1187_v60, %v1163_v22  ;;  %v1170_v9 = vmul.f32 %v1161_v32, %v2404_v31  ;;  %v1196_v52 = vmul.f32 %v1188_v44, %v1164_v2  ;;  %v1198_v28 = vmul.f32 %v1190_v30, %v1166_v54  ;;  %v1492_v2 = vld [vmem:[%s1591_s29 + $0x10] sm:$0xff] }
 0x4cf   : > { %v1191_v8 = vmin.f32 %v1183_v37, 6.0  ;;  %v1177_v38 = vadd.f32 3.0, %v1169_v56  ;;  %v1205_v0 = vmul.f32 0.16666667, %v1197_v4  ;;  %v1192_v42 = vmin.f32 %v1184_v41, 6.0 }
 0x4d0   : > { %v1203_v33 = vmul.f32 0.16666667, %v1195_v20  ;;  %v1178_v48 = vadd.f32 3.0, %v1170_v9  ;;  %v1204_v53 = vmul.f32 0.16666667, %v1196_v52 }
 0x4d1   : > { %v1185_v36 = vmax.f32 %v1177_v38, 0.0  ;;  %v1206_v6 = vmul.f32 0.16666667, %v1198_v28  ;;  %v1199_v47 = vmul.f32 %v1191_v8, %v1167_v45  ;;  %v1200_v27 = vmul.f32 %v1192_v42, %v1168_v12  ;;  %v1303_v29 = vpop.permute.xlu1 %1302 }
 0x4d2   : > { %v1186_v14 = vmax.f32 %v1178_v48, 0.0  ;;  %v1402_v23 = vpack.c.bf16 %v1205_v0, %v1203_v33 }
 0x4d3   : > { %v1193_v15 = vmin.f32 %v1185_v36, 6.0  ;;  %v1400_v58 = vpack.c.bf16 %v1206_v6, %v1204_v53  ;;  %v1207_v34 = vmul.f32 0.16666667, %v1199_v47  ;;  %v1208_v55 = vmul.f32 0.16666667, %v1200_v27 }
 0x4d4   : > { %v1194_v3 = vmin.f32 %v1186_v14, 6.0 }
 0x4d5   : > { %v1201_v62 = vmul.f32 %v1193_v15, %v1169_v56  ;;  %1401 = vmatprep.subr.bf16.mxu1 %v1400_v58  ;;  %v1307_v7 = vpop.permute.xlu1 %1306 }
 0x4d6   : > { %v1202_v31 = vmul.f32 %v1194_v3, %v1170_v9  ;;  %1403 = vmatpush1.bf16.msra.mxu1 %v1402_v23 }
 0x4d7   : > { %v1209_v13 = vmul.f32 0.16666667, %v1201_v62 }
 0x4d8   : > { %v1210_v50 = vmul.f32 0.16666667, %v1202_v31 }
 0x4d9   : > { %v1406_v18 = vpack.c.bf16 %v1209_v13, %v1207_v34 }
 0x4da   : > { %v1404_v61 = vpack.c.bf16 %v1210_v50, %v1208_v55 }
 0x4dc   : > { %1405 = vmatprep.subr.bf16.mxu1 %v1404_v61 }
 0x4dd   : > { %1407 = vmatpush1.bf16.msra.mxu1 %v1406_v18 }
 0x4e0   : > { %1390 = vmatmul.mubr.msk.f32.vlgmr.msra.gmra.mrb[0].mxu1 %vm1213_vm11, %v1211_v25 }
 0x4e1   : > { %1290 = vmatprep.mubr.f32.mxu1 %v2564_v16 }
 0x4e4   : > { %1391 = vmatmul.mubr.msk.f32.gmra.mrb[2].mxu1 %vm1213_vm11, %v1212_v1 }
 0x5b3   : > { %v1286_v51 = vpop.f32.mrb[0].mxu1 }
 0x5b4   : > { %v1297_v17 = vadd.f32 %v1490_v39, %v1286_v51  ;;  %v1288_v26 = vpop.f32.mrb[1].mxu1 }
 0x5b5   : > { %v1298_v49 = vadd.f32 %v1491_v63, %v1288_v26 }
 0x5b6   : > { %v1309_v40 = vadd.f32 %v1303_v29, %v1297_v17 }
 0x5b7   : > { %v1310_v54 = vadd.f32 %v1303_v29, %v1298_v49  ;;  %v1292_v22 = vpop.f32.mrb[2].mxu1 }
 0x5b8   : > { %1313 = vst [vmem:[%s224_s22] sm:$0xff] %v1309_v40  ;;  %v1299_v59 = vadd.f32 %v1492_v2, %v1292_v22  ;;  %v1294_v24 = vpop.f32.mrb[3].mxu1 }
 0x5b9   : > { %1314 = vst [vmem:[%s224_s22 + $0x8] sm:$0xff] %v1310_v54  ;;  %v1300_v5 = vadd.f32 %v1493_v46, %v1294_v24 }
 0x5ba   : > { %v1311_v43 = vadd.f32 %v1307_v7, %v1299_v59 }
 0x5bb   : > { %v1312_v10 = vadd.f32 %v1307_v7, %v1300_v5 }
 0x5bc   : > { %1315 = vst [vmem:[%s224_s22 + $0x10] sm:$0xff] %v1311_v43 }
 0x5bd   : > { %1316 = vst [vmem:[%s224_s22 + $0x18] sm:$0xff] %v1312_v10 }
 0x5be PF: > { %s15_s18 = sadd.s32 1, %s1500_s18  }
 0x5bf   : > { %p12_p4 = scmp.ge.s32.totalorder %s15_s18, 4  }
 0x5c1   :  { %14 = sbr.rel (!%p12_p4) target bundleno = 1 (0x1), region = 70 }

</bundles_post_ra>
